<compile_context>
chip_gen: v7x
topology: tpu7x:2x2x1
jax: 0.10.0
libtpu: 0.0.40
codegen_flags: <defaults>
</compile_context>

<pallas_src>
import numpy as np
import jax
import jax.numpy as jnp
from jax import lax
from jax.experimental import pallas as pl
from jax.experimental.pallas import tpu as pltpu

LANE = 128
MAX_B_TILE = 512   # safe on v5e/v6e/v7x with packed back pointers; >=2 grid steps for B > 512


def _round_up(x, m):
    return (x + m - 1) // m * m


def ssvm_viterbi_kernel(lens_ref, feats_ref, trans_t_ref, path_ref, bp_ref):
    # lens_ref   : (1, Bt)    i32  per-batch sequence lengths (sum of mask)
    # feats_ref  : (S, T, Bt) f32  emission scores, time-major, batch on lanes
    # trans_t_ref: (T, T)     f32  TRANSPOSED transitions: trans_t[j, i] = transitions[i, j]
    # path_ref   : (S, Bt)    i32  decoded path (time-major), output
    # bp_ref     : (S, Bt)    i32  scratch: nibble-packed back pointers
    #                              (bits 4j..4j+3 of bp[t-1, b] = best prev tag for dest tag j)
    S, T, Bt = feats_ref.shape
    trans_t = trans_t_ref[...]
    lens = lens_ref[...]                                   # (1, Bt)
    lens_m1 = lens - 1                                     # hoisted out of the backtrace loop

    # Hoisted loop invariants: trans_cols[i][j, 0] = transitions[i, j]; nibble shifts.
    trans_cols = [trans_t[:, i:i + 1] for i in range(T)]   # each (T, 1)
    nib_shift = lax.broadcasted_iota(jnp.int32, (T, 1), 0) * 4

    def maxplus(partition):
        # best[j, b]     = max_i (transitions[i, j] + partition[i, b])
        # best_idx[j, b] = first argmax_i  (numpy-style first-max tie break)
        # All T adds are independent; the max is a pairwise tree of depth ceil(log2 T),
        # which shortens the serial carry chain vs a linear running max.
        items = [(trans_cols[i] + partition[i:i + 1, :], jnp.int32(i)) for i in range(T)]

        def merge(a, b):
            av, ai = a
            bv, bi = b
            take_a = av >= bv        # left operand always holds the lower indices -> first max wins
            return jnp.where(take_a, av, bv), jnp.where(take_a, ai, bi)

        while len(items) > 1:
            nxt = [merge(items[k], items[k + 1]) for k in range(0, len(items) - 1, 2)]
            if len(items) % 2:
                nxt.append(items[-1])
            items = nxt
        best, best_idx = items[0]
        best_idx = jnp.broadcast_to(best_idx, (T, Bt)).astype(jnp.int32)
        return best, best_idx

    # t = 0: partition[j, b] = feats[0, j, b] + transitions[START, j]
    partition0 = feats_ref[0] + trans_cols[T - 2]          # (T, Bt)

    def fwd_body(t, carry):
        partition, last_partition = carry
        best, best_idx = maxplus(partition)
        new_part = best + feats_ref[t]                     # (T, Bt)
        live = t < lens                                    # (1, Bt) bool
        # Nibble-pack the T back pointers of each lane into one int32 (cross-sublane reduce).
        packed = jnp.sum(best_idx << nib_shift, axis=0, keepdims=True)   # (1, Bt)
        bp_ref[pl.ds(t - 1, 1), :] = jnp.where(live, packed, 0)          # masked_fill_(mask==0, 0)
        last_partition = jnp.where(live, new_part, last_partition)
        return new_part, last_partition

    _, last_partition = lax.fori_loop(
        1, S, fwd_body, (partition0, partition0), unroll=min(8, max(S - 1, 1)))

    # Final transition into END tag: pointer[b] = argmax_i(last_partition[i,b] + trans[i, END]).
    _, last_bp = maxplus(last_partition)
    pointer = last_bp[T - 1:T, :]                          # (1, Bt)

    # Backtrace.  The torch scatter of `pointer` into back_points[length-1] is realised
    # as the idx == lens-1 override; the bp gather is a per-lane shift+mask (VPU only).
    path_ref[pl.ds(S - 1, 1), :] = pointer

    def bwd_body(k, ptr):
        idx = S - 2 - k
        row = bp_ref[pl.ds(idx, 1), :]                     # (1, Bt) packed back pointers
        gathered = (row >> (ptr * 4)) & 0xF                # nibble at position ptr
        new_ptr = jnp.where(idx == lens_m1, pointer, gathered)
        path_ref[pl.ds(idx, 1), :] = new_ptr
        return new_ptr

    lax.fori_loop(0, S - 1, bwd_body, pointer, unroll=min(8, max(S - 1, 1)))
    # TODO(synk): on v5e, batch 8 consecutive path rows into one (8, Bt) store to save vst slots.


def make_transitions(target_size):
    # Exact replica of SSVM.__init__ parameter initialisation.
    T = target_size + 2
    trans = np.zeros((T, T), dtype=np.float32)
    trans[:, -2] = -1000.0   # transitions[:, START_TAG_IDX]
    trans[-1, :] = -1000.0   # transitions[END_TAG_IDX, :]
    return jnp.asarray(trans)


def _choose_tile(batch):
    b128 = _round_up(max(batch, 1), LANE)
    tile = min(MAX_B_TILE, b128)
    b_pad = _round_up(b128, tile)
    return tile, b_pad


@jax.jit
def ssvm_forward(feats, mask, transitions):
    # NOTE: sequences are assumed non-empty (length >= 1 per batch row), matching the
    # PyTorch module's implicit assumption (it would gather at index -1 otherwise).
    B, S, T = feats.shape
    assert T <= 8, "nibble-packed back pointers require tag_size <= 8"
    # TODO(synk): fall back to an unpacked (S, T, Bt) back-pointer scratch when tag_size > 8.
    b_tile, b_pad = _choose_tile(B)

    lengths = jnp.sum(mask.astype(jnp.int32), axis=1)                    # (B,)
    lengths = jnp.pad(lengths, (0, b_pad - B)).reshape(1, b_pad)
    # Transpose first, then pad only the trailing (lane) axis so XLA fuses pad+copy
    # into a single pass over feats.
    feats_tm = jnp.transpose(feats.astype(jnp.float32), (1, 2, 0))       # (S, T, B)
    feats_tm = jnp.pad(feats_tm, ((0, 0), (0, 0), (0, b_pad - B)))       # (S, T, b_pad)
    trans_t = jnp.transpose(transitions.astype(jnp.float32), (1, 0))     # (T, T)

    # VMEM budget: feats (double-buffered) + packed bp scratch + path (double-buffered) + margin.
    need = 4 * S * b_tile * (2 * T + 3) + (1 << 20)
    vmem_limit = int(max(need + (4 << 20), 32 << 20))

    path_tm = pl.pallas_call(
        ssvm_viterbi_kernel,
        out_shape=jax.ShapeDtypeStruct((S, b_pad), jnp.int32),
        grid_spec=pltpu.PrefetchScalarGridSpec(
            num_scalar_prefetch=0,
            grid=(b_pad // b_tile,),
            in_specs=[
                pl.BlockSpec((1, b_tile), lambda i: (0, i)),             # lengths
                pl.BlockSpec((S, T, b_tile), lambda i: (0, 0, i)),       # feats (time-major)
                pl.BlockSpec((T, T), lambda i: (0, 0)),                  # transitions^T
            ],
            out_specs=pl.BlockSpec((S, b_tile), lambda i: (0, i)),
            scratch_shapes=[pltpu.VMEM((S, b_tile), jnp.int32)],         # packed back pointers
        ),
        compiler_params=pltpu.CompilerParams(
            dimension_semantics=("parallel",),
            vmem_limit_bytes=vmem_limit),
    )(lengths, feats_tm, trans_t)
    # tiny int32 transpose of the decoded path back to (B, S)
    return jnp.transpose(path_tm, (1, 0))[:B]


def ssvm_reference(feats, mask, trans):
    # NumPy mirror of SSVM._viterbi_decode.  Same recurrence as the PyTorch module;
    # float-add order matches the kernel so the integer decode is bit-identical.
    B, S, T = feats.shape
    lengths = mask.sum(axis=1)
    partition = feats[:, 0, :] + trans[T - 2, :][None, :]                # (B, T)
    last_partition = partition.copy()
    bps = np.zeros((S, B, T), dtype=np.int64)                            # pad_zero at slot S-1
    for t in range(1, S):
        vals = trans[None, :, :] + partition[:, :, None]                 # [b, i, j]
        best = vals.max(axis=1)
        best_idx = vals.argmax(axis=1)
        partition = best + feats[:, t, :]
        live = mask[:, t] != 0
        bps[t - 1] = np.where(live[:, None], best_idx, 0)
        last_partition = np.where(live[:, None], partition, last_partition)
    last_vals = trans[None, :, :] + last_partition[:, :, None]
    pointer = last_vals.argmax(axis=1)[:, T - 1]                         # (B,)
    bps[lengths - 1, np.arange(B), :] = pointer[:, None]                 # torch scatter_
    decode = np.zeros((S, B), dtype=np.int64)
    decode[S - 1] = pointer
    for idx in range(S - 2, -1, -1):
        pointer = bps[idx, np.arange(B), pointer]
        decode[idx] = pointer
    return decode.T


if __name__ == "__main__":
    target_size = 4
    batch, seq_len = 2, 8
    T = target_size + 2

    key = jax.random.PRNGKey(0)
    feats = jax.random.normal(key, (batch, seq_len, T), dtype=jnp.float32)
    lengths = np.array([seq_len, 5], dtype=np.int32)
    mask_np = (np.arange(seq_len)[None, :] < lengths[:, None]).astype(np.int32)
    mask = jnp.asarray(mask_np)
    transitions = make_transitions(target_size)

    best_path = jax.block_until_ready(ssvm_forward(feats, mask, transitions))

    ref = ssvm_reference(np.asarray(feats), mask_np, np.asarray(transitions))
    assert best_path.shape == (batch, seq_len)
    np.testing.assert_array_equal(np.asarray(best_path), ref.astype(np.int32))
    print("KERNEL_OK")
</pallas_src>

<mosaic_0001>
module attributes {stable_mosaic.version = 11 : i64} {
  func.func @ssvm_viterbi_kernel(%arg0: i32, %arg1: memref<1x128xi32, #tpu.memory_space<vmem>>, %arg2: memref<8x6x128xf32, #tpu.memory_space<vmem>>, %arg3: memref<6x6xf32, #tpu.memory_space<vmem>>, %arg4: memref<8x128xi32, #tpu.memory_space<vmem>>, %arg5: memref<8x128xi32, #tpu.memory_space<vmem>>) attributes {dimension_semantics = [#tpu.dimension_semantics<parallel>], iteration_bounds = array<i64: 1>, scalar_prefetch = 0 : i64, scratch_operands = 1 : i64, tpu.core_type = #tpu.core_type<tc>, window_params = [{transform_indices = @transform_0, window_bounds = array<i64: 1, 128>}, {transform_indices = @transform_1, window_bounds = array<i64: 8, 6, 128>}, {pipeline_mode = #tpu.pipeline_mode<synchronous>, transform_indices = @transform_2, window_bounds = array<i64: 6, 6>}, {transform_indices = @transform_3, window_bounds = array<i64: 8, 128>}]} {
    %c0 = arith.constant 0 : index
    %c0_0 = arith.constant 0 : index
    %0 = vector.load %arg3[%c0, %c0_0] : memref<6x6xf32, #tpu.memory_space<vmem>>, vector<6x6xf32>
    %c0_1 = arith.constant 0 : index
    %c0_2 = arith.constant 0 : index
    %1 = vector.load %arg1[%c0_1, %c0_2] : memref<1x128xi32, #tpu.memory_space<vmem>>, vector<1x128xi32>
    %c1_i32 = arith.constant 1 : i32
    %2 = vector.broadcast %c1_i32 : i32 to vector<1x128xi32>
    %3 = arith.subi %1, %2 : vector<1x128xi32>
    %4 = vector.extract_strided_slice %0 {offsets = [0, 0], sizes = [6, 1], strides = [1, 1]} : vector<6x6xf32> to vector<6x1xf32>
    %5 = vector.extract_strided_slice %0 {offsets = [0, 1], sizes = [6, 1], strides = [1, 1]} : vector<6x6xf32> to vector<6x1xf32>
    %6 = vector.extract_strided_slice %0 {offsets = [0, 2], sizes = [6, 1], strides = [1, 1]} : vector<6x6xf32> to vector<6x1xf32>
    %7 = vector.extract_strided_slice %0 {offsets = [0, 3], sizes = [6, 1], strides = [1, 1]} : vector<6x6xf32> to vector<6x1xf32>
    %8 = vector.extract_strided_slice %0 {offsets = [0, 4], sizes = [6, 1], strides = [1, 1]} : vector<6x6xf32> to vector<6x1xf32>
    %9 = vector.extract_strided_slice %0 {offsets = [0, 5], sizes = [6, 1], strides = [1, 1]} : vector<6x6xf32> to vector<6x1xf32>
    %10 = tpu.iota {dimensions = array<i32: 0>} : vector<6x1xi32>
    %c4_i32 = arith.constant 4 : i32
    %11 = vector.broadcast %c4_i32 : i32 to vector<6x1xi32>
    %12 = arith.muli %10, %11 : vector<6x1xi32>
    %c0_3 = arith.constant 0 : index
    %c0_4 = arith.constant 0 : index
    %c0_5 = arith.constant 0 : index
    %13 = vector.load %arg2[%c0_3, %c0_4, %c0_5] : memref<8x6x128xf32, #tpu.memory_space<vmem>>, vector<1x6x128xf32>
    %14 = vector.shape_cast %13 : vector<1x6x128xf32> to vector<6x128xf32>
    %15 = vector.broadcast %8 : vector<6x1xf32> to vector<6x128xf32>
    %16 = arith.addf %14, %15 : vector<6x128xf32>
    %c1_i32_6 = arith.constant 1 : i32
    %17 = vector.extract_strided_slice %16 {offsets = [0, 0], sizes = [1, 128], strides = [1, 1]} : vector<6x128xf32> to vector<1x128xf32>
    %18 = vector.broadcast %4 : vector<6x1xf32> to vector<6x128xf32>
    %19 = vector.broadcast %17 : vector<1x128xf32> to vector<6x128xf32>
    %20 = arith.addf %18, %19 : vector<6x128xf32>
    %21 = vector.extract_strided_slice %16 {offsets = [1, 0], sizes = [1, 128], strides = [1, 1]} : vector<6x128xf32> to vector<1x128xf32>
    %22 = vector.broadcast %5 : vector<6x1xf32> to vector<6x128xf32>
    %23 = vector.broadcast %21 : vector<1x128xf32> to vector<6x128xf32>
    %24 = arith.addf %22, %23 : vector<6x128xf32>
    %25 = vector.extract_strided_slice %16 {offsets = [2, 0], sizes = [1, 128], strides = [1, 1]} : vector<6x128xf32> to vector<1x128xf32>
    %26 = vector.broadcast %6 : vector<6x1xf32> to vector<6x128xf32>
    %27 = vector.broadcast %25 : vector<1x128xf32> to vector<6x128xf32>
    %28 = arith.addf %26, %27 : vector<6x128xf32>
    %29 = vector.extract_strided_slice %16 {offsets = [3, 0], sizes = [1, 128], strides = [1, 1]} : vector<6x128xf32> to vector<1x128xf32>
    %30 = vector.broadcast %7 : vector<6x1xf32> to vector<6x128xf32>
    %31 = vector.broadcast %29 : vector<1x128xf32> to vector<6x128xf32>
    %32 = arith.addf %30, %31 : vector<6x128xf32>
    %33 = vector.extract_strided_slice %16 {offsets = [4, 0], sizes = [1, 128], strides = [1, 1]} : vector<6x128xf32> to vector<1x128xf32>
    %34 = vector.broadcast %8 : vector<6x1xf32> to vector<6x128xf32>
    %35 = vector.broadcast %33 : vector<1x128xf32> to vector<6x128xf32>
    %36 = arith.addf %34, %35 : vector<6x128xf32>
    %37 = vector.extract_strided_slice %16 {offsets = [5, 0], sizes = [1, 128], strides = [1, 1]} : vector<6x128xf32> to vector<1x128xf32>
    %38 = vector.broadcast %9 : vector<6x1xf32> to vector<6x128xf32>
    %39 = vector.broadcast %37 : vector<1x128xf32> to vector<6x128xf32>
    %40 = arith.addf %38, %39 : vector<6x128xf32>
    %41 = arith.cmpf oge, %20, %24 : vector<6x128xf32>
    %42 = arith.select %41, %20, %24 : vector<6x128xi1>, vector<6x128xf32>
    %c0_i32 = arith.constant 0 : i32
    %c1_i32_7 = arith.constant 1 : i32
    %43 = vector.broadcast %c0_i32 : i32 to vector<6x128xi32>
    %44 = vector.broadcast %c1_i32_7 : i32 to vector<6x128xi32>
    %45 = arith.select %41, %43, %44 : vector<6x128xi1>, vector<6x128xi32>
    %46 = arith.cmpf oge, %28, %32 : vector<6x128xf32>
    %47 = arith.select %46, %28, %32 : vector<6x128xi1>, vector<6x128xf32>
    %c2_i32 = arith.constant 2 : i32
    %c3_i32 = arith.constant 3 : i32
    %48 = vector.broadcast %c2_i32 : i32 to vector<6x128xi32>
    %49 = vector.broadcast %c3_i32 : i32 to vector<6x128xi32>
    %50 = arith.select %46, %48, %49 : vector<6x128xi1>, vector<6x128xi32>
    %51 = arith.cmpf oge, %36, %40 : vector<6x128xf32>
    %52 = arith.select %51, %36, %40 : vector<6x128xi1>, vector<6x128xf32>
    %c4_i32_8 = arith.constant 4 : i32
    %c5_i32 = arith.constant 5 : i32
    %53 = vector.broadcast %c4_i32_8 : i32 to vector<6x128xi32>
    %54 = vector.broadcast %c5_i32 : i32 to vector<6x128xi32>
    %55 = arith.select %51, %53, %54 : vector<6x128xi1>, vector<6x128xi32>
    %56 = arith.cmpf oge, %42, %47 : vector<6x128xf32>
    %57 = arith.select %56, %42, %47 : vector<6x128xi1>, vector<6x128xf32>
    %58 = arith.select %56, %45, %50 : vector<6x128xi1>, vector<6x128xi32>
    %59 = arith.cmpf oge, %57, %52 : vector<6x128xf32>
    %60 = arith.select %59, %57, %52 : vector<6x128xi1>, vector<6x128xf32>
    %61 = arith.select %59, %58, %55 : vector<6x128xi1>, vector<6x128xi32>
    %62 = arith.index_cast %c1_i32_6 : i32 to index
    %c0_9 = arith.constant 0 : index
    %c0_10 = arith.constant 0 : index
    %63 = vector.load %arg2[%62, %c0_9, %c0_10] : memref<8x6x128xf32, #tpu.memory_space<vmem>>, vector<1x6x128xf32>
    %64 = vector.shape_cast %63 : vector<1x6x128xf32> to vector<6x128xf32>
    %65 = arith.addf %60, %64 : vector<6x128xf32>
    %66 = vector.broadcast %c1_i32_6 : i32 to vector<1x128xi32>
    %67 = arith.cmpi slt, %66, %1 : vector<1x128xi32>
    %68 = vector.broadcast %12 : vector<6x1xi32> to vector<6x128xi32>
    %69 = arith.shli %61, %68 : vector<6x128xi32>
    %cst = arith.constant dense<0> : vector<128xi32>
    %70 = vector.multi_reduction <add>, %69, %cst [0] : vector<6x128xi32> to vector<128xi32>
    %71 = vector.shape_cast %70 : vector<128xi32> to vector<1x128xi32>
    %c0_i32_11 = arith.constant 0 : i32
    %72 = vector.broadcast %c0_i32_11 : i32 to vector<1x128xi32>
    %73 = arith.select %67, %71, %72 : vector<1x128xi1>, vector<1x128xi32>
    %c1_i32_12 = arith.constant 1 : i32
    %74 = arith.subi %c1_i32_6, %c1_i32_12 : i32
    %75 = arith.index_cast %74 : i32 to index
    %c0_13 = arith.constant 0 : index
    %76 = vector.load %arg5[%75, %c0_13] : memref<8x128xi32, #tpu.memory_space<vmem>>, vector<1x128xi32>
    tpu.vector_store %arg5[%75, %c0_13], %73 {strides = array<i32>} : memref<8x128xi32, #tpu.memory_space<vmem>>, vector<1x128xi32>,
    %77 = vector.shape_cast %67 : vector<1x128xi1> to vector<1x128xi1>
    %78 = vector.broadcast %77 : vector<1x128xi1> to vector<6x128xi1>
    %79 = arith.select %78, %65, %16 : vector<6x128xi1>, vector<6x128xf32>
    %c2_i32_14 = arith.constant 2 : i32
    %80 = vector.extract_strided_slice %65 {offsets = [0, 0], sizes = [1, 128], strides = [1, 1]} : vector<6x128xf32> to vector<1x128xf32>
    %81 = vector.broadcast %4 : vector<6x1xf32> to vector<6x128xf32>
    %82 = vector.broadcast %80 : vector<1x128xf32> to vector<6x128xf32>
    %83 = arith.addf %81, %82 : vector<6x128xf32>
    %84 = vector.extract_strided_slice %65 {offsets = [1, 0], sizes = [1, 128], strides = [1, 1]} : vector<6x128xf32> to vector<1x128xf32>
    %85 = vector.broadcast %5 : vector<6x1xf32> to vector<6x128xf32>
    %86 = vector.broadcast %84 : vector<1x128xf32> to vector<6x128xf32>
    %87 = arith.addf %85, %86 : vector<6x128xf32>
    %88 = vector.extract_strided_slice %65 {offsets = [2, 0], sizes = [1, 128], strides = [1, 1]} : vector<6x128xf32> to vector<1x128xf32>
    %89 = vector.broadcast %6 : vector<6x1xf32> to vector<6x128xf32>
    %90 = vector.broadcast %88 : vector<1x128xf32> to vector<6x128xf32>
    %91 = arith.addf %89, %90 : vector<6x128xf32>
    %92 = vector.extract_strided_slice %65 {offsets = [3, 0], sizes = [1, 128], strides = [1, 1]} : vector<6x128xf32> to vector<1x128xf32>
    %93 = vector.broadcast %7 : vector<6x1xf32> to vector<6x128xf32>
    %94 = vector.broadcast %92 : vector<1x128xf32> to vector<6x128xf32>
    %95 = arith.addf %93, %94 : vector<6x128xf32>
    %96 = vector.extract_strided_slice %65 {offsets = [4, 0], sizes = [1, 128], strides = [1, 1]} : vector<6x128xf32> to vector<1x128xf32>
    %97 = vector.broadcast %8 : vector<6x1xf32> to vector<6x128xf32>
    %98 = vector.broadcast %96 : vector<1x128xf32> to vector<6x128xf32>
    %99 = arith.addf %97, %98 : vector<6x128xf32>
    %100 = vector.extract_strided_slice %65 {offsets = [5, 0], sizes = [1, 128], strides = [1, 1]} : vector<6x128xf32> to vector<1x128xf32>
    %101 = vector.broadcast %9 : vector<6x1xf32> to vector<6x128xf32>
    %102 = vector.broadcast %100 : vector<1x128xf32> to vector<6x128xf32>
    %103 = arith.addf %101, %102 : vector<6x128xf32>
    %104 = arith.cmpf oge, %83, %87 : vector<6x128xf32>
    %105 = arith.select %104, %83, %87 : vector<6x128xi1>, vector<6x128xf32>
    %c0_i32_15 = arith.constant 0 : i32
    %c1_i32_16 = arith.constant 1 : i32
    %106 = vector.broadcast %c0_i32_15 : i32 to vector<6x128xi32>
    %107 = vector.broadcast %c1_i32_16 : i32 to vector<6x128xi32>
    %108 = arith.select %104, %106, %107 : vector<6x128xi1>, vector<6x128xi32>
    %109 = arith.cmpf oge, %91, %95 : vector<6x128xf32>
    %110 = arith.select %109, %91, %95 : vector<6x128xi1>, vector<6x128xf32>
    %c2_i32_17 = arith.constant 2 : i32
    %c3_i32_18 = arith.constant 3 : i32
    %111 = vector.broadcast %c2_i32_17 : i32 to vector<6x128xi32>
    %112 = vector.broadcast %c3_i32_18 : i32 to vector<6x128xi32>
    %113 = arith.select %109, %111, %112 : vector<6x128xi1>, vector<6x128xi32>
    %114 = arith.cmpf oge, %99, %103 : vector<6x128xf32>
    %115 = arith.select %114, %99, %103 : vector<6x128xi1>, vector<6x128xf32>
    %c4_i32_19 = arith.constant 4 : i32
    %c5_i32_20 = arith.constant 5 : i32
    %116 = vector.broadcast %c4_i32_19 : i32 to vector<6x128xi32>
    %117 = vector.broadcast %c5_i32_20 : i32 to vector<6x128xi32>
    %118 = arith.select %114, %116, %117 : vector<6x128xi1>, vector<6x128xi32>
    %119 = arith.cmpf oge, %105, %110 : vector<6x128xf32>
    %120 = arith.select %119, %105, %110 : vector<6x128xi1>, vector<6x128xf32>
    %121 = arith.select %119, %108, %113 : vector<6x128xi1>, vector<6x128xi32>
    %122 = arith.cmpf oge, %120, %115 : vector<6x128xf32>
    %123 = arith.select %122, %120, %115 : vector<6x128xi1>, vector<6x128xf32>
    %124 = arith.select %122, %121, %118 : vector<6x128xi1>, vector<6x128xi32>
    %125 = arith.index_cast %c2_i32_14 : i32 to index
    %c0_21 = arith.constant 0 : index
    %c0_22 = arith.constant 0 : index
    %126 = vector.load %arg2[%125, %c0_21, %c0_22] : memref<8x6x128xf32, #tpu.memory_space<vmem>>, vector<1x6x128xf32>
    %127 = vector.shape_cast %126 : vector<1x6x128xf32> to vector<6x128xf32>
    %128 = arith.addf %123, %127 : vector<6x128xf32>
    %129 = vector.broadcast %c2_i32_14 : i32 to vector<1x128xi32>
    %130 = arith.cmpi slt, %129, %1 : vector<1x128xi32>
    %131 = vector.broadcast %12 : vector<6x1xi32> to vector<6x128xi32>
    %132 = arith.shli %124, %131 : vector<6x128xi32>
    %cst_23 = arith.constant dense<0> : vector<128xi32>
    %133 = vector.multi_reduction <add>, %132, %cst_23 [0] : vector<6x128xi32> to vector<128xi32>
    %134 = vector.shape_cast %133 : vector<128xi32> to vector<1x128xi32>
    %c0_i32_24 = arith.constant 0 : i32
    %135 = vector.broadcast %c0_i32_24 : i32 to vector<1x128xi32>
    %136 = arith.select %130, %134, %135 : vector<1x128xi1>, vector<1x128xi32>
    %c1_i32_25 = arith.constant 1 : i32
    %137 = arith.subi %c2_i32_14, %c1_i32_25 : i32
    %138 = arith.index_cast %137 : i32 to index
    %c0_26 = arith.constant 0 : index
    %139 = vector.load %arg5[%138, %c0_26] : memref<8x128xi32, #tpu.memory_space<vmem>>, vector<1x128xi32>
    tpu.vector_store %arg5[%138, %c0_26], %136 {strides = array<i32>} : memref<8x128xi32, #tpu.memory_space<vmem>>, vector<1x128xi32>,
    %140 = vector.shape_cast %130 : vector<1x128xi1> to vector<1x128xi1>
    %141 = vector.broadcast %140 : vector<1x128xi1> to vector<6x128xi1>
    %142 = arith.select %141, %128, %79 : vector<6x128xi1>, vector<6x128xf32>
    %c3_i32_27 = arith.constant 3 : i32
    %143 = vector.extract_strided_slice %128 {offsets = [0, 0], sizes = [1, 128], strides = [1, 1]} : vector<6x128xf32> to vector<1x128xf32>
    %144 = vector.broadcast %4 : vector<6x1xf32> to vector<6x128xf32>
    %145 = vector.broadcast %143 : vector<1x128xf32> to vector<6x128xf32>
    %146 = arith.addf %144, %145 : vector<6x128xf32>
    %147 = vector.extract_strided_slice %128 {offsets = [1, 0], sizes = [1, 128], strides = [1, 1]} : vector<6x128xf32> to vector<1x128xf32>
    %148 = vector.broadcast %5 : vector<6x1xf32> to vector<6x128xf32>
    %149 = vector.broadcast %147 : vector<1x128xf32> to vector<6x128xf32>
    %150 = arith.addf %148, %149 : vector<6x128xf32>
    %151 = vector.extract_strided_slice %128 {offsets = [2, 0], sizes = [1, 128], strides = [1, 1]} : vector<6x128xf32> to vector<1x128xf32>
    %152 = vector.broadcast %6 : vector<6x1xf32> to vector<6x128xf32>
    %153 = vector.broadcast %151 : vector<1x128xf32> to vector<6x128xf32>
    %154 = arith.addf %152, %153 : vector<6x128xf32>
    %155 = vector.extract_strided_slice %128 {offsets = [3, 0], sizes = [1, 128], strides = [1, 1]} : vector<6x128xf32> to vector<1x128xf32>
    %156 = vector.broadcast %7 : vector<6x1xf32> to vector<6x128xf32>
    %157 = vector.broadcast %155 : vector<1x128xf32> to vector<6x128xf32>
    %158 = arith.addf %156, %157 : vector<6x128xf32>
    %159 = vector.extract_strided_slice %128 {offsets = [4, 0], sizes = [1, 128], strides = [1, 1]} : vector<6x128xf32> to vector<1x128xf32>
    %160 = vector.broadcast %8 : vector<6x1xf32> to vector<6x128xf32>
    %161 = vector.broadcast %159 : vector<1x128xf32> to vector<6x128xf32>
    %162 = arith.addf %160, %161 : vector<6x128xf32>
    %163 = vector.extract_strided_slice %128 {offsets = [5, 0], sizes = [1, 128], strides = [1, 1]} : vector<6x128xf32> to vector<1x128xf32>
    %164 = vector.broadcast %9 : vector<6x1xf32> to vector<6x128xf32>
    %165 = vector.broadcast %163 : vector<1x128xf32> to vector<6x128xf32>
    %166 = arith.addf %164, %165 : vector<6x128xf32>
    %167 = arith.cmpf oge, %146, %150 : vector<6x128xf32>
    %168 = arith.select %167, %146, %150 : vector<6x128xi1>, vector<6x128xf32>
    %c0_i32_28 = arith.constant 0 : i32
    %c1_i32_29 = arith.constant 1 : i32
    %169 = vector.broadcast %c0_i32_28 : i32 to vector<6x128xi32>
    %170 = vector.broadcast %c1_i32_29 : i32 to vector<6x128xi32>
    %171 = arith.select %167, %169, %170 : vector<6x128xi1>, vector<6x128xi32>
    %172 = arith.cmpf oge, %154, %158 : vector<6x128xf32>
    %173 = arith.select %172, %154, %158 : vector<6x128xi1>, vector<6x128xf32>
    %c2_i32_30 = arith.constant 2 : i32
    %c3_i32_31 = arith.constant 3 : i32
    %174 = vector.broadcast %c2_i32_30 : i32 to vector<6x128xi32>
    %175 = vector.broadcast %c3_i32_31 : i32 to vector<6x128xi32>
    %176 = arith.select %172, %174, %175 : vector<6x128xi1>, vector<6x128xi32>
    %177 = arith.cmpf oge, %162, %166 : vector<6x128xf32>
    %178 = arith.select %177, %162, %166 : vector<6x128xi1>, vector<6x128xf32>
    %c4_i32_32 = arith.constant 4 : i32
    %c5_i32_33 = arith.constant 5 : i32
    %179 = vector.broadcast %c4_i32_32 : i32 to vector<6x128xi32>
    %180 = vector.broadcast %c5_i32_33 : i32 to vector<6x128xi32>
    %181 = arith.select %177, %179, %180 : vector<6x128xi1>, vector<6x128xi32>
    %182 = arith.cmpf oge, %168, %173 : vector<6x128xf32>
    %183 = arith.select %182, %168, %173 : vector<6x128xi1>, vector<6x128xf32>
    %184 = arith.select %182, %171, %176 : vector<6x128xi1>, vector<6x128xi32>
    %185 = arith.cmpf oge, %183, %178 : vector<6x128xf32>
    %186 = arith.select %185, %183, %178 : vector<6x128xi1>, vector<6x128xf32>
    %187 = arith.select %185, %184, %181 : vector<6x128xi1>, vector<6x128xi32>
    %188 = arith.index_cast %c3_i32_27 : i32 to index
    %c0_34 = arith.constant 0 : index
    %c0_35 = arith.constant 0 : index
    %189 = vector.load %arg2[%188, %c0_34, %c0_35] : memref<8x6x128xf32, #tpu.memory_space<vmem>>, vector<1x6x128xf32>
    %190 = vector.shape_cast %189 : vector<1x6x128xf32> to vector<6x128xf32>
    %191 = arith.addf %186, %190 : vector<6x128xf32>
    %192 = vector.broadcast %c3_i32_27 : i32 to vector<1x128xi32>
    %193 = arith.cmpi slt, %192, %1 : vector<1x128xi32>
    %194 = vector.broadcast %12 : vector<6x1xi32> to vector<6x128xi32>
    %195 = arith.shli %187, %194 : vector<6x128xi32>
    %cst_36 = arith.constant dense<0> : vector<128xi32>
    %196 = vector.multi_reduction <add>, %195, %cst_36 [0] : vector<6x128xi32> to vector<128xi32>
    %197 = vector.shape_cast %196 : vector<128xi32> to vector<1x128xi32>
    %c0_i32_37 = arith.constant 0 : i32
    %198 = vector.broadcast %c0_i32_37 : i32 to vector<1x128xi32>
    %199 = arith.select %193, %197, %198 : vector<1x128xi1>, vector<1x128xi32>
    %c1_i32_38 = arith.constant 1 : i32
    %200 = arith.subi %c3_i32_27, %c1_i32_38 : i32
    %201 = arith.index_cast %200 : i32 to index
    %c0_39 = arith.constant 0 : index
    %202 = vector.load %arg5[%201, %c0_39] : memref<8x128xi32, #tpu.memory_space<vmem>>, vector<1x128xi32>
    tpu.vector_store %arg5[%201, %c0_39], %199 {strides = array<i32>} : memref<8x128xi32, #tpu.memory_space<vmem>>, vector<1x128xi32>,
    %203 = vector.shape_cast %193 : vector<1x128xi1> to vector<1x128xi1>
    %204 = vector.broadcast %203 : vector<1x128xi1> to vector<6x128xi1>
    %205 = arith.select %204, %191, %142 : vector<6x128xi1>, vector<6x128xf32>
    %c4_i32_40 = arith.constant 4 : i32
    %206 = vector.extract_strided_slice %191 {offsets = [0, 0], sizes = [1, 128], strides = [1, 1]} : vector<6x128xf32> to vector<1x128xf32>
    %207 = vector.broadcast %4 : vector<6x1xf32> to vector<6x128xf32>
    %208 = vector.broadcast %206 : vector<1x128xf32> to vector<6x128xf32>
    %209 = arith.addf %207, %208 : vector<6x128xf32>
    %210 = vector.extract_strided_slice %191 {offsets = [1, 0], sizes = [1, 128], strides = [1, 1]} : vector<6x128xf32> to vector<1x128xf32>
    %211 = vector.broadcast %5 : vector<6x1xf32> to vector<6x128xf32>
    %212 = vector.broadcast %210 : vector<1x128xf32> to vector<6x128xf32>
    %213 = arith.addf %211, %212 : vector<6x128xf32>
    %214 = vector.extract_strided_slice %191 {offsets = [2, 0], sizes = [1, 128], strides = [1, 1]} : vector<6x128xf32> to vector<1x128xf32>
    %215 = vector.broadcast %6 : vector<6x1xf32> to vector<6x128xf32>
    %216 = vector.broadcast %214 : vector<1x128xf32> to vector<6x128xf32>
    %217 = arith.addf %215, %216 : vector<6x128xf32>
    %218 = vector.extract_strided_slice %191 {offsets = [3, 0], sizes = [1, 128], strides = [1, 1]} : vector<6x128xf32> to vector<1x128xf32>
    %219 = vector.broadcast %7 : vector<6x1xf32> to vector<6x128xf32>
    %220 = vector.broadcast %218 : vector<1x128xf32> to vector<6x128xf32>
    %221 = arith.addf %219, %220 : vector<6x128xf32>
    %222 = vector.extract_strided_slice %191 {offsets = [4, 0], sizes = [1, 128], strides = [1, 1]} : vector<6x128xf32> to vector<1x128xf32>
    %223 = vector.broadcast %8 : vector<6x1xf32> to vector<6x128xf32>
    %224 = vector.broadcast %222 : vector<1x128xf32> to vector<6x128xf32>
    %225 = arith.addf %223, %224 : vector<6x128xf32>
    %226 = vector.extract_strided_slice %191 {offsets = [5, 0], sizes = [1, 128], strides = [1, 1]} : vector<6x128xf32> to vector<1x128xf32>
    %227 = vector.broadcast %9 : vector<6x1xf32> to vector<6x128xf32>
    %228 = vector.broadcast %226 : vector<1x128xf32> to vector<6x128xf32>
    %229 = arith.addf %227, %228 : vector<6x128xf32>
    %230 = arith.cmpf oge, %209, %213 : vector<6x128xf32>
    %231 = arith.select %230, %209, %213 : vector<6x128xi1>, vector<6x128xf32>
    %c0_i32_41 = arith.constant 0 : i32
    %c1_i32_42 = arith.constant 1 : i32
    %232 = vector.broadcast %c0_i32_41 : i32 to vector<6x128xi32>
    %233 = vector.broadcast %c1_i32_42 : i32 to vector<6x128xi32>
    %234 = arith.select %230, %232, %233 : vector<6x128xi1>, vector<6x128xi32>
    %235 = arith.cmpf oge, %217, %221 : vector<6x128xf32>
    %236 = arith.select %235, %217, %221 : vector<6x128xi1>, vector<6x128xf32>
    %c2_i32_43 = arith.constant 2 : i32
    %c3_i32_44 = arith.constant 3 : i32
    %237 = vector.broadcast %c2_i32_43 : i32 to vector<6x128xi32>
    %238 = vector.broadcast %c3_i32_44 : i32 to vector<6x128xi32>
    %239 = arith.select %235, %237, %238 : vector<6x128xi1>, vector<6x128xi32>
    %240 = arith.cmpf oge, %225, %229 : vector<6x128xf32>
    %241 = arith.select %240, %225, %229 : vector<6x128xi1>, vector<6x128xf32>
    %c4_i32_45 = arith.constant 4 : i32
    %c5_i32_46 = arith.constant 5 : i32
    %242 = vector.broadcast %c4_i32_45 : i32 to vector<6x128xi32>
    %243 = vector.broadcast %c5_i32_46 : i32 to vector<6x128xi32>
    %244 = arith.select %240, %242, %243 : vector<6x128xi1>, vector<6x128xi32>
    %245 = arith.cmpf oge, %231, %236 : vector<6x128xf32>
    %246 = arith.select %245, %231, %236 : vector<6x128xi1>, vector<6x128xf32>
    %247 = arith.select %245, %234, %239 : vector<6x128xi1>, vector<6x128xi32>
    %248 = arith.cmpf oge, %246, %241 : vector<6x128xf32>
    %249 = arith.select %248, %246, %241 : vector<6x128xi1>, vector<6x128xf32>
    %250 = arith.select %248, %247, %244 : vector<6x128xi1>, vector<6x128xi32>
    %251 = arith.index_cast %c4_i32_40 : i32 to index
    %c0_47 = arith.constant 0 : index
    %c0_48 = arith.constant 0 : index
    %252 = vector.load %arg2[%251, %c0_47, %c0_48] : memref<8x6x128xf32, #tpu.memory_space<vmem>>, vector<1x6x128xf32>
    %253 = vector.shape_cast %252 : vector<1x6x128xf32> to vector<6x128xf32>
    %254 = arith.addf %249, %253 : vector<6x128xf32>
    %255 = vector.broadcast %c4_i32_40 : i32 to vector<1x128xi32>
    %256 = arith.cmpi slt, %255, %1 : vector<1x128xi32>
    %257 = vector.broadcast %12 : vector<6x1xi32> to vector<6x128xi32>
    %258 = arith.shli %250, %257 : vector<6x128xi32>
    %cst_49 = arith.constant dense<0> : vector<128xi32>
    %259 = vector.multi_reduction <add>, %258, %cst_49 [0] : vector<6x128xi32> to vector<128xi32>
    %260 = vector.shape_cast %259 : vector<128xi32> to vector<1x128xi32>
    %c0_i32_50 = arith.constant 0 : i32
    %261 = vector.broadcast %c0_i32_50 : i32 to vector<1x128xi32>
    %262 = arith.select %256, %260, %261 : vector<1x128xi1>, vector<1x128xi32>
    %c1_i32_51 = arith.constant 1 : i32
    %263 = arith.subi %c4_i32_40, %c1_i32_51 : i32
    %264 = arith.index_cast %263 : i32 to index
    %c0_52 = arith.constant 0 : index
    %265 = vector.load %arg5[%264, %c0_52] : memref<8x128xi32, #tpu.memory_space<vmem>>, vector<1x128xi32>
    tpu.vector_store %arg5[%264, %c0_52], %262 {strides = array<i32>} : memref<8x128xi32, #tpu.memory_space<vmem>>, vector<1x128xi32>,
    %266 = vector.shape_cast %256 : vector<1x128xi1> to vector<1x128xi1>
    %267 = vector.broadcast %266 : vector<1x128xi1> to vector<6x128xi1>
    %268 = arith.select %267, %254, %205 : vector<6x128xi1>, vector<6x128xf32>
    %c5_i32_53 = arith.constant 5 : i32
    %269 = vector.extract_strided_slice %254 {offsets = [0, 0], sizes = [1, 128], strides = [1, 1]} : vector<6x128xf32> to vector<1x128xf32>
    %270 = vector.broadcast %4 : vector<6x1xf32> to vector<6x128xf32>
    %271 = vector.broadcast %269 : vector<1x128xf32> to vector<6x128xf32>
    %272 = arith.addf %270, %271 : vector<6x128xf32>
    %273 = vector.extract_strided_slice %254 {offsets = [1, 0], sizes = [1, 128], strides = [1, 1]} : vector<6x128xf32> to vector<1x128xf32>
    %274 = vector.broadcast %5 : vector<6x1xf32> to vector<6x128xf32>
    %275 = vector.broadcast %273 : vector<1x128xf32> to vector<6x128xf32>
    %276 = arith.addf %274, %275 : vector<6x128xf32>
    %277 = vector.extract_strided_slice %254 {offsets = [2, 0], sizes = [1, 128], strides = [1, 1]} : vector<6x128xf32> to vector<1x128xf32>
    %278 = vector.broadcast %6 : vector<6x1xf32> to vector<6x128xf32>
    %279 = vector.broadcast %277 : vector<1x128xf32> to vector<6x128xf32>
    %280 = arith.addf %278, %279 : vector<6x128xf32>
    %281 = vector.extract_strided_slice %254 {offsets = [3, 0], sizes = [1, 128], strides = [1, 1]} : vector<6x128xf32> to vector<1x128xf32>
    %282 = vector.broadcast %7 : vector<6x1xf32> to vector<6x128xf32>
    %283 = vector.broadcast %281 : vector<1x128xf32> to vector<6x128xf32>
    %284 = arith.addf %282, %283 : vector<6x128xf32>
    %285 = vector.extract_strided_slice %254 {offsets = [4, 0], sizes = [1, 128], strides = [1, 1]} : vector<6x128xf32> to vector<1x128xf32>
    %286 = vector.broadcast %8 : vector<6x1xf32> to vector<6x128xf32>
    %287 = vector.broadcast %285 : vector<1x128xf32> to vector<6x128xf32>
    %288 = arith.addf %286, %287 : vector<6x128xf32>
    %289 = vector.extract_strided_slice %254 {offsets = [5, 0], sizes = [1, 128], strides = [1, 1]} : vector<6x128xf32> to vector<1x128xf32>
    %290 = vector.broadcast %9 : vector<6x1xf32> to vector<6x128xf32>
    %291 = vector.broadcast %289 : vector<1x128xf32> to vector<6x128xf32>
    %292 = arith.addf %290, %291 : vector<6x128xf32>
    %293 = arith.cmpf oge, %272, %276 : vector<6x128xf32>
    %294 = arith.select %293, %272, %276 : vector<6x128xi1>, vector<6x128xf32>
    %c0_i32_54 = arith.constant 0 : i32
    %c1_i32_55 = arith.constant 1 : i32
    %295 = vector.broadcast %c0_i32_54 : i32 to vector<6x128xi32>
    %296 = vector.broadcast %c1_i32_55 : i32 to vector<6x128xi32>
    %297 = arith.select %293, %295, %296 : vector<6x128xi1>, vector<6x128xi32>
    %298 = arith.cmpf oge, %280, %284 : vector<6x128xf32>
    %299 = arith.select %298, %280, %284 : vector<6x128xi1>, vector<6x128xf32>
    %c2_i32_56 = arith.constant 2 : i32
    %c3_i32_57 = arith.constant 3 : i32
    %300 = vector.broadcast %c2_i32_56 : i32 to vector<6x128xi32>
    %301 = vector.broadcast %c3_i32_57 : i32 to vector<6x128xi32>
    %302 = arith.select %298, %300, %301 : vector<6x128xi1>, vector<6x128xi32>
    %303 = arith.cmpf oge, %288, %292 : vector<6x128xf32>
    %304 = arith.select %303, %288, %292 : vector<6x128xi1>, vector<6x128xf32>
    %c4_i32_58 = arith.constant 4 : i32
    %c5_i32_59 = arith.constant 5 : i32
    %305 = vector.broadcast %c4_i32_58 : i32 to vector<6x128xi32>
    %306 = vector.broadcast %c5_i32_59 : i32 to vector<6x128xi32>
    %307 = arith.select %303, %305, %306 : vector<6x128xi1>, vector<6x128xi32>
    %308 = arith.cmpf oge, %294, %299 : vector<6x128xf32>
    %309 = arith.select %308, %294, %299 : vector<6x128xi1>, vector<6x128xf32>
    %310 = arith.select %308, %297, %302 : vector<6x128xi1>, vector<6x128xi32>
    %311 = arith.cmpf oge, %309, %304 : vector<6x128xf32>
    %312 = arith.select %311, %309, %304 : vector<6x128xi1>, vector<6x128xf32>
    %313 = arith.select %311, %310, %307 : vector<6x128xi1>, vector<6x128xi32>
    %314 = arith.index_cast %c5_i32_53 : i32 to index
    %c0_60 = arith.constant 0 : index
    %c0_61 = arith.constant 0 : index
    %315 = vector.load %arg2[%314, %c0_60, %c0_61] : memref<8x6x128xf32, #tpu.memory_space<vmem>>, vector<1x6x128xf32>
    %316 = vector.shape_cast %315 : vector<1x6x128xf32> to vector<6x128xf32>
    %317 = arith.addf %312, %316 : vector<6x128xf32>
    %318 = vector.broadcast %c5_i32_53 : i32 to vector<1x128xi32>
    %319 = arith.cmpi slt, %318, %1 : vector<1x128xi32>
    %320 = vector.broadcast %12 : vector<6x1xi32> to vector<6x128xi32>
    %321 = arith.shli %313, %320 : vector<6x128xi32>
    %cst_62 = arith.constant dense<0> : vector<128xi32>
    %322 = vector.multi_reduction <add>, %321, %cst_62 [0] : vector<6x128xi32> to vector<128xi32>
    %323 = vector.shape_cast %322 : vector<128xi32> to vector<1x128xi32>
    %c0_i32_63 = arith.constant 0 : i32
    %324 = vector.broadcast %c0_i32_63 : i32 to vector<1x128xi32>
    %325 = arith.select %319, %323, %324 : vector<1x128xi1>, vector<1x128xi32>
    %c1_i32_64 = arith.constant 1 : i32
    %326 = arith.subi %c5_i32_53, %c1_i32_64 : i32
    %327 = arith.index_cast %326 : i32 to index
    %c0_65 = arith.constant 0 : index
    %328 = vector.load %arg5[%327, %c0_65] : memref<8x128xi32, #tpu.memory_space<vmem>>, vector<1x128xi32>
    tpu.vector_store %arg5[%327, %c0_65], %325 {strides = array<i32>} : memref<8x128xi32, #tpu.memory_space<vmem>>, vector<1x128xi32>,
    %329 = vector.shape_cast %319 : vector<1x128xi1> to vector<1x128xi1>
    %330 = vector.broadcast %329 : vector<1x128xi1> to vector<6x128xi1>
    %331 = arith.select %330, %317, %268 : vector<6x128xi1>, vector<6x128xf32>
    %c6_i32 = arith.constant 6 : i32
    %332 = vector.extract_strided_slice %317 {offsets = [0, 0], sizes = [1, 128], strides = [1, 1]} : vector<6x128xf32> to vector<1x128xf32>
    %333 = vector.broadcast %4 : vector<6x1xf32> to vector<6x128xf32>
    %334 = vector.broadcast %332 : vector<1x128xf32> to vector<6x128xf32>
    %335 = arith.addf %333, %334 : vector<6x128xf32>
    %336 = vector.extract_strided_slice %317 {offsets = [1, 0], sizes = [1, 128], strides = [1, 1]} : vector<6x128xf32> to vector<1x128xf32>
    %337 = vector.broadcast %5 : vector<6x1xf32> to vector<6x128xf32>
    %338 = vector.broadcast %336 : vector<1x128xf32> to vector<6x128xf32>
    %339 = arith.addf %337, %338 : vector<6x128xf32>
    %340 = vector.extract_strided_slice %317 {offsets = [2, 0], sizes = [1, 128], strides = [1, 1]} : vector<6x128xf32> to vector<1x128xf32>
    %341 = vector.broadcast %6 : vector<6x1xf32> to vector<6x128xf32>
    %342 = vector.broadcast %340 : vector<1x128xf32> to vector<6x128xf32>
    %343 = arith.addf %341, %342 : vector<6x128xf32>
    %344 = vector.extract_strided_slice %317 {offsets = [3, 0], sizes = [1, 128], strides = [1, 1]} : vector<6x128xf32> to vector<1x128xf32>
    %345 = vector.broadcast %7 : vector<6x1xf32> to vector<6x128xf32>
    %346 = vector.broadcast %344 : vector<1x128xf32> to vector<6x128xf32>
    %347 = arith.addf %345, %346 : vector<6x128xf32>
    %348 = vector.extract_strided_slice %317 {offsets = [4, 0], sizes = [1, 128], strides = [1, 1]} : vector<6x128xf32> to vector<1x128xf32>
    %349 = vector.broadcast %8 : vector<6x1xf32> to vector<6x128xf32>
    %350 = vector.broadcast %348 : vector<1x128xf32> to vector<6x128xf32>
    %351 = arith.addf %349, %350 : vector<6x128xf32>
    %352 = vector.extract_strided_slice %317 {offsets = [5, 0], sizes = [1, 128], strides = [1, 1]} : vector<6x128xf32> to vector<1x128xf32>
    %353 = vector.broadcast %9 : vector<6x1xf32> to vector<6x128xf32>
    %354 = vector.broadcast %352 : vector<1x128xf32> to vector<6x128xf32>
    %355 = arith.addf %353, %354 : vector<6x128xf32>
    %356 = arith.cmpf oge, %335, %339 : vector<6x128xf32>
    %357 = arith.select %356, %335, %339 : vector<6x128xi1>, vector<6x128xf32>
    %c0_i32_66 = arith.constant 0 : i32
    %c1_i32_67 = arith.constant 1 : i32
    %358 = vector.broadcast %c0_i32_66 : i32 to vector<6x128xi32>
    %359 = vector.broadcast %c1_i32_67 : i32 to vector<6x128xi32>
    %360 = arith.select %356, %358, %359 : vector<6x128xi1>, vector<6x128xi32>
    %361 = arith.cmpf oge, %343, %347 : vector<6x128xf32>
    %362 = arith.select %361, %343, %347 : vector<6x128xi1>, vector<6x128xf32>
    %c2_i32_68 = arith.constant 2 : i32
    %c3_i32_69 = arith.constant 3 : i32
    %363 = vector.broadcast %c2_i32_68 : i32 to vector<6x128xi32>
    %364 = vector.broadcast %c3_i32_69 : i32 to vector<6x128xi32>
    %365 = arith.select %361, %363, %364 : vector<6x128xi1>, vector<6x128xi32>
    %366 = arith.cmpf oge, %351, %355 : vector<6x128xf32>
    %367 = arith.select %366, %351, %355 : vector<6x128xi1>, vector<6x128xf32>
    %c4_i32_70 = arith.constant 4 : i32
    %c5_i32_71 = arith.constant 5 : i32
    %368 = vector.broadcast %c4_i32_70 : i32 to vector<6x128xi32>
    %369 = vector.broadcast %c5_i32_71 : i32 to vector<6x128xi32>
    %370 = arith.select %366, %368, %369 : vector<6x128xi1>, vector<6x128xi32>
    %371 = arith.cmpf oge, %357, %362 : vector<6x128xf32>
    %372 = arith.select %371, %357, %362 : vector<6x128xi1>, vector<6x128xf32>
    %373 = arith.select %371, %360, %365 : vector<6x128xi1>, vector<6x128xi32>
    %374 = arith.cmpf oge, %372, %367 : vector<6x128xf32>
    %375 = arith.select %374, %372, %367 : vector<6x128xi1>, vector<6x128xf32>
    %376 = arith.select %374, %373, %370 : vector<6x128xi1>, vector<6x128xi32>
    %377 = arith.index_cast %c6_i32 : i32 to index
    %c0_72 = arith.constant 0 : index
    %c0_73 = arith.constant 0 : index
    %378 = vector.load %arg2[%377, %c0_72, %c0_73] : memref<8x6x128xf32, #tpu.memory_space<vmem>>, vector<1x6x128xf32>
    %379 = vector.shape_cast %378 : vector<1x6x128xf32> to vector<6x128xf32>
    %380 = arith.addf %375, %379 : vector<6x128xf32>
    %381 = vector.broadcast %c6_i32 : i32 to vector<1x128xi32>
    %382 = arith.cmpi slt, %381, %1 : vector<1x128xi32>
    %383 = vector.broadcast %12 : vector<6x1xi32> to vector<6x128xi32>
    %384 = arith.shli %376, %383 : vector<6x128xi32>
    %cst_74 = arith.constant dense<0> : vector<128xi32>
    %385 = vector.multi_reduction <add>, %384, %cst_74 [0] : vector<6x128xi32> to vector<128xi32>
    %386 = vector.shape_cast %385 : vector<128xi32> to vector<1x128xi32>
    %c0_i32_75 = arith.constant 0 : i32
    %387 = vector.broadcast %c0_i32_75 : i32 to vector<1x128xi32>
    %388 = arith.select %382, %386, %387 : vector<1x128xi1>, vector<1x128xi32>
    %c1_i32_76 = arith.constant 1 : i32
    %389 = arith.subi %c6_i32, %c1_i32_76 : i32
    %390 = arith.index_cast %389 : i32 to index
    %c0_77 = arith.constant 0 : index
    %391 = vector.load %arg5[%390, %c0_77] : memref<8x128xi32, #tpu.memory_space<vmem>>, vector<1x128xi32>
    tpu.vector_store %arg5[%390, %c0_77], %388 {strides = array<i32>} : memref<8x128xi32, #tpu.memory_space<vmem>>, vector<1x128xi32>,
    %392 = vector.shape_cast %382 : vector<1x128xi1> to vector<1x128xi1>
    %393 = vector.broadcast %392 : vector<1x128xi1> to vector<6x128xi1>
    %394 = arith.select %393, %380, %331 : vector<6x128xi1>, vector<6x128xf32>
    %c7_i32 = arith.constant 7 : i32
    %395 = vector.extract_strided_slice %380 {offsets = [0, 0], sizes = [1, 128], strides = [1, 1]} : vector<6x128xf32> to vector<1x128xf32>
    %396 = vector.broadcast %4 : vector<6x1xf32> to vector<6x128xf32>
    %397 = vector.broadcast %395 : vector<1x128xf32> to vector<6x128xf32>
    %398 = arith.addf %396, %397 : vector<6x128xf32>
    %399 = vector.extract_strided_slice %380 {offsets = [1, 0], sizes = [1, 128], strides = [1, 1]} : vector<6x128xf32> to vector<1x128xf32>
    %400 = vector.broadcast %5 : vector<6x1xf32> to vector<6x128xf32>
    %401 = vector.broadcast %399 : vector<1x128xf32> to vector<6x128xf32>
    %402 = arith.addf %400, %401 : vector<6x128xf32>
    %403 = vector.extract_strided_slice %380 {offsets = [2, 0], sizes = [1, 128], strides = [1, 1]} : vector<6x128xf32> to vector<1x128xf32>
    %404 = vector.broadcast %6 : vector<6x1xf32> to vector<6x128xf32>
    %405 = vector.broadcast %403 : vector<1x128xf32> to vector<6x128xf32>
    %406 = arith.addf %404, %405 : vector<6x128xf32>
    %407 = vector.extract_strided_slice %380 {offsets = [3, 0], sizes = [1, 128], strides = [1, 1]} : vector<6x128xf32> to vector<1x128xf32>
    %408 = vector.broadcast %7 : vector<6x1xf32> to vector<6x128xf32>
    %409 = vector.broadcast %407 : vector<1x128xf32> to vector<6x128xf32>
    %410 = arith.addf %408, %409 : vector<6x128xf32>
    %411 = vector.extract_strided_slice %380 {offsets = [4, 0], sizes = [1, 128], strides = [1, 1]} : vector<6x128xf32> to vector<1x128xf32>
    %412 = vector.broadcast %8 : vector<6x1xf32> to vector<6x128xf32>
    %413 = vector.broadcast %411 : vector<1x128xf32> to vector<6x128xf32>
    %414 = arith.addf %412, %413 : vector<6x128xf32>
    %415 = vector.extract_strided_slice %380 {offsets = [5, 0], sizes = [1, 128], strides = [1, 1]} : vector<6x128xf32> to vector<1x128xf32>
    %416 = vector.broadcast %9 : vector<6x1xf32> to vector<6x128xf32>
    %417 = vector.broadcast %415 : vector<1x128xf32> to vector<6x128xf32>
    %418 = arith.addf %416, %417 : vector<6x128xf32>
    %419 = arith.cmpf oge, %398, %402 : vector<6x128xf32>
    %420 = arith.select %419, %398, %402 : vector<6x128xi1>, vector<6x128xf32>
    %c0_i32_78 = arith.constant 0 : i32
    %c1_i32_79 = arith.constant 1 : i32
    %421 = vector.broadcast %c0_i32_78 : i32 to vector<6x128xi32>
    %422 = vector.broadcast %c1_i32_79 : i32 to vector<6x128xi32>
    %423 = arith.select %419, %421, %422 : vector<6x128xi1>, vector<6x128xi32>
    %424 = arith.cmpf oge, %406, %410 : vector<6x128xf32>
    %425 = arith.select %424, %406, %410 : vector<6x128xi1>, vector<6x128xf32>
    %c2_i32_80 = arith.constant 2 : i32
    %c3_i32_81 = arith.constant 3 : i32
    %426 = vector.broadcast %c2_i32_80 : i32 to vector<6x128xi32>
    %427 = vector.broadcast %c3_i32_81 : i32 to vector<6x128xi32>
    %428 = arith.select %424, %426, %427 : vector<6x128xi1>, vector<6x128xi32>
    %429 = arith.cmpf oge, %414, %418 : vector<6x128xf32>
    %430 = arith.select %429, %414, %418 : vector<6x128xi1>, vector<6x128xf32>
    %c4_i32_82 = arith.constant 4 : i32
    %c5_i32_83 = arith.constant 5 : i32
    %431 = vector.broadcast %c4_i32_82 : i32 to vector<6x128xi32>
    %432 = vector.broadcast %c5_i32_83 : i32 to vector<6x128xi32>
    %433 = arith.select %429, %431, %432 : vector<6x128xi1>, vector<6x128xi32>
    %434 = arith.cmpf oge, %420, %425 : vector<6x128xf32>
    %435 = arith.select %434, %420, %425 : vector<6x128xi1>, vector<6x128xf32>
    %436 = arith.select %434, %423, %428 : vector<6x128xi1>, vector<6x128xi32>
    %437 = arith.cmpf oge, %435, %430 : vector<6x128xf32>
    %438 = arith.select %437, %435, %430 : vector<6x128xi1>, vector<6x128xf32>
    %439 = arith.select %437, %436, %433 : vector<6x128xi1>, vector<6x128xi32>
    %440 = arith.index_cast %c7_i32 : i32 to index
    %c0_84 = arith.constant 0 : index
    %c0_85 = arith.constant 0 : index
    %441 = vector.load %arg2[%440, %c0_84, %c0_85] : memref<8x6x128xf32, #tpu.memory_space<vmem>>, vector<1x6x128xf32>
    %442 = vector.shape_cast %441 : vector<1x6x128xf32> to vector<6x128xf32>
    %443 = arith.addf %438, %442 : vector<6x128xf32>
    %444 = vector.broadcast %c7_i32 : i32 to vector<1x128xi32>
    %445 = arith.cmpi slt, %444, %1 : vector<1x128xi32>
    %446 = vector.broadcast %12 : vector<6x1xi32> to vector<6x128xi32>
    %447 = arith.shli %439, %446 : vector<6x128xi32>
    %cst_86 = arith.constant dense<0> : vector<128xi32>
    %448 = vector.multi_reduction <add>, %447, %cst_86 [0] : vector<6x128xi32> to vector<128xi32>
    %449 = vector.shape_cast %448 : vector<128xi32> to vector<1x128xi32>
    %c0_i32_87 = arith.constant 0 : i32
    %450 = vector.broadcast %c0_i32_87 : i32 to vector<1x128xi32>
    %451 = arith.select %445, %449, %450 : vector<1x128xi1>, vector<1x128xi32>
    %c1_i32_88 = arith.constant 1 : i32
    %452 = arith.subi %c7_i32, %c1_i32_88 : i32
    %453 = arith.index_cast %452 : i32 to index
    %c0_89 = arith.constant 0 : index
    %454 = vector.load %arg5[%453, %c0_89] : memref<8x128xi32, #tpu.memory_space<vmem>>, vector<1x128xi32>
    tpu.vector_store %arg5[%453, %c0_89], %451 {strides = array<i32>} : memref<8x128xi32, #tpu.memory_space<vmem>>, vector<1x128xi32>,
    %455 = vector.shape_cast %445 : vector<1x128xi1> to vector<1x128xi1>
    %456 = vector.broadcast %455 : vector<1x128xi1> to vector<6x128xi1>
    %457 = arith.select %456, %443, %394 : vector<6x128xi1>, vector<6x128xf32>
    %c7_i32_90 = arith.constant 7 : i32
    %458 = vector.extract_strided_slice %457 {offsets = [0, 0], sizes = [1, 128], strides = [1, 1]} : vector<6x128xf32> to vector<1x128xf32>
    %459 = vector.broadcast %4 : vector<6x1xf32> to vector<6x128xf32>
    %460 = vector.broadcast %458 : vector<1x128xf32> to vector<6x128xf32>
    %461 = arith.addf %459, %460 : vector<6x128xf32>
    %462 = vector.extract_strided_slice %457 {offsets = [1, 0], sizes = [1, 128], strides = [1, 1]} : vector<6x128xf32> to vector<1x128xf32>
    %463 = vector.broadcast %5 : vector<6x1xf32> to vector<6x128xf32>
    %464 = vector.broadcast %462 : vector<1x128xf32> to vector<6x128xf32>
    %465 = arith.addf %463, %464 : vector<6x128xf32>
    %466 = vector.extract_strided_slice %457 {offsets = [2, 0], sizes = [1, 128], strides = [1, 1]} : vector<6x128xf32> to vector<1x128xf32>
    %467 = vector.broadcast %6 : vector<6x1xf32> to vector<6x128xf32>
    %468 = vector.broadcast %466 : vector<1x128xf32> to vector<6x128xf32>
    %469 = arith.addf %467, %468 : vector<6x128xf32>
    %470 = vector.extract_strided_slice %457 {offsets = [3, 0], sizes = [1, 128], strides = [1, 1]} : vector<6x128xf32> to vector<1x128xf32>
    %471 = vector.broadcast %7 : vector<6x1xf32> to vector<6x128xf32>
    %472 = vector.broadcast %470 : vector<1x128xf32> to vector<6x128xf32>
    %473 = arith.addf %471, %472 : vector<6x128xf32>
    %474 = vector.extract_strided_slice %457 {offsets = [4, 0], sizes = [1, 128], strides = [1, 1]} : vector<6x128xf32> to vector<1x128xf32>
    %475 = vector.broadcast %8 : vector<6x1xf32> to vector<6x128xf32>
    %476 = vector.broadcast %474 : vector<1x128xf32> to vector<6x128xf32>
    %477 = arith.addf %475, %476 : vector<6x128xf32>
    %478 = vector.extract_strided_slice %457 {offsets = [5, 0], sizes = [1, 128], strides = [1, 1]} : vector<6x128xf32> to vector<1x128xf32>
    %479 = vector.broadcast %9 : vector<6x1xf32> to vector<6x128xf32>
    %480 = vector.broadcast %478 : vector<1x128xf32> to vector<6x128xf32>
    %481 = arith.addf %479, %480 : vector<6x128xf32>
    %482 = arith.cmpf oge, %461, %465 : vector<6x128xf32>
    %483 = arith.select %482, %461, %465 : vector<6x128xi1>, vector<6x128xf32>
    %c0_i32_91 = arith.constant 0 : i32
    %c1_i32_92 = arith.constant 1 : i32
    %484 = vector.broadcast %c0_i32_91 : i32 to vector<6x128xi32>
    %485 = vector.broadcast %c1_i32_92 : i32 to vector<6x128xi32>
    %486 = arith.select %482, %484, %485 : vector<6x128xi1>, vector<6x128xi32>
    %487 = arith.cmpf oge, %469, %473 : vector<6x128xf32>
    %488 = arith.select %487, %469, %473 : vector<6x128xi1>, vector<6x128xf32>
    %c2_i32_93 = arith.constant 2 : i32
    %c3_i32_94 = arith.constant 3 : i32
    %489 = vector.broadcast %c2_i32_93 : i32 to vector<6x128xi32>
    %490 = vector.broadcast %c3_i32_94 : i32 to vector<6x128xi32>
    %491 = arith.select %487, %489, %490 : vector<6x128xi1>, vector<6x128xi32>
    %492 = arith.cmpf oge, %477, %481 : vector<6x128xf32>
    %493 = arith.select %492, %477, %481 : vector<6x128xi1>, vector<6x128xf32>
    %c4_i32_95 = arith.constant 4 : i32
    %c5_i32_96 = arith.constant 5 : i32
    %494 = vector.broadcast %c4_i32_95 : i32 to vector<6x128xi32>
    %495 = vector.broadcast %c5_i32_96 : i32 to vector<6x128xi32>
    %496 = arith.select %492, %494, %495 : vector<6x128xi1>, vector<6x128xi32>
    %497 = arith.cmpf oge, %483, %488 : vector<6x128xf32>
    %498 = arith.select %497, %483, %488 : vector<6x128xi1>, vector<6x128xf32>
    %499 = arith.select %497, %486, %491 : vector<6x128xi1>, vector<6x128xi32>
    %500 = arith.cmpf oge, %498, %493 : vector<6x128xf32>
    %501 = arith.select %500, %499, %496 : vector<6x128xi1>, vector<6x128xi32>
    %502 = vector.extract_strided_slice %501 {offsets = [5, 0], sizes = [1, 128], strides = [1, 1]} : vector<6x128xi32> to vector<1x128xi32>
    %c7 = arith.constant 7 : index
    %c0_97 = arith.constant 0 : index
    %503 = vector.load %arg4[%c7, %c0_97] : memref<8x128xi32, #tpu.memory_space<vmem>>, vector<1x128xi32>
    tpu.vector_store %arg4[%c7, %c0_97], %502 {strides = array<i32>} : memref<8x128xi32, #tpu.memory_space<vmem>>, vector<1x128xi32>,
    %c0_i32_98 = arith.constant 0 : i32
    %c6_i32_99 = arith.constant 6 : i32
    %504 = arith.subi %c6_i32_99, %c0_i32_98 : i32
    %505 = arith.index_cast %504 : i32 to index
    %c0_100 = arith.constant 0 : index
    %506 = vector.load %arg5[%505, %c0_100] : memref<8x128xi32, #tpu.memory_space<vmem>>, vector<1x128xi32>
    %c4_i32_101 = arith.constant 4 : i32
    %507 = vector.broadcast %c4_i32_101 : i32 to vector<1x128xi32>
    %508 = arith.muli %502, %507 : vector<1x128xi32>
    %509 = arith.shrsi %506, %508 : vector<1x128xi32>
    %c15_i32 = arith.constant 15 : i32
    %510 = vector.broadcast %c15_i32 : i32 to vector<1x128xi32>
    %511 = arith.andi %509, %510 : vector<1x128xi32>
    %512 = vector.broadcast %504 : i32 to vector<1x128xi32>
    %513 = arith.cmpi eq, %512, %3 : vector<1x128xi32>
    %514 = arith.select %513, %502, %511 : vector<1x128xi1>, vector<1x128xi32>
    %515 = arith.index_cast %504 : i32 to index
    %c0_102 = arith.constant 0 : index
    %516 = vector.load %arg4[%515, %c0_102] : memref<8x128xi32, #tpu.memory_space<vmem>>, vector<1x128xi32>
    tpu.vector_store %arg4[%515, %c0_102], %514 {strides = array<i32>} : memref<8x128xi32, #tpu.memory_space<vmem>>, vector<1x128xi32>,
    %c1_i32_103 = arith.constant 1 : i32
    %c6_i32_104 = arith.constant 6 : i32
    %517 = arith.subi %c6_i32_104, %c1_i32_103 : i32
    %518 = arith.index_cast %517 : i32 to index
    %c0_105 = arith.constant 0 : index
    %519 = vector.load %arg5[%518, %c0_105] : memref<8x128xi32, #tpu.memory_space<vmem>>, vector<1x128xi32>
    %c4_i32_106 = arith.constant 4 : i32
    %520 = vector.broadcast %c4_i32_106 : i32 to vector<1x128xi32>
    %521 = arith.muli %514, %520 : vector<1x128xi32>
    %522 = arith.shrsi %519, %521 : vector<1x128xi32>
    %c15_i32_107 = arith.constant 15 : i32
    %523 = vector.broadcast %c15_i32_107 : i32 to vector<1x128xi32>
    %524 = arith.andi %522, %523 : vector<1x128xi32>
    %525 = vector.broadcast %517 : i32 to vector<1x128xi32>
    %526 = arith.cmpi eq, %525, %3 : vector<1x128xi32>
    %527 = arith.select %526, %502, %524 : vector<1x128xi1>, vector<1x128xi32>
    %528 = arith.index_cast %517 : i32 to index
    %c0_108 = arith.constant 0 : index
    %529 = vector.load %arg4[%528, %c0_108] : memref<8x128xi32, #tpu.memory_space<vmem>>, vector<1x128xi32>
    tpu.vector_store %arg4[%528, %c0_108], %527 {strides = array<i32>} : memref<8x128xi32, #tpu.memory_space<vmem>>, vector<1x128xi32>,
    %c2_i32_109 = arith.constant 2 : i32
    %c6_i32_110 = arith.constant 6 : i32
    %530 = arith.subi %c6_i32_110, %c2_i32_109 : i32
    %531 = arith.index_cast %530 : i32 to index
    %c0_111 = arith.constant 0 : index
    %532 = vector.load %arg5[%531, %c0_111] : memref<8x128xi32, #tpu.memory_space<vmem>>, vector<1x128xi32>
    %c4_i32_112 = arith.constant 4 : i32
    %533 = vector.broadcast %c4_i32_112 : i32 to vector<1x128xi32>
    %534 = arith.muli %527, %533 : vector<1x128xi32>
    %535 = arith.shrsi %532, %534 : vector<1x128xi32>
    %c15_i32_113 = arith.constant 15 : i32
    %536 = vector.broadcast %c15_i32_113 : i32 to vector<1x128xi32>
    %537 = arith.andi %535, %536 : vector<1x128xi32>
    %538 = vector.broadcast %530 : i32 to vector<1x128xi32>
    %539 = arith.cmpi eq, %538, %3 : vector<1x128xi32>
    %540 = arith.select %539, %502, %537 : vector<1x128xi1>, vector<1x128xi32>
    %541 = arith.index_cast %530 : i32 to index
    %c0_114 = arith.constant 0 : index
    %542 = vector.load %arg4[%541, %c0_114] : memref<8x128xi32, #tpu.memory_space<vmem>>, vector<1x128xi32>
    tpu.vector_store %arg4[%541, %c0_114], %540 {strides = array<i32>} : memref<8x128xi32, #tpu.memory_space<vmem>>, vector<1x128xi32>,
    %c3_i32_115 = arith.constant 3 : i32
    %c6_i32_116 = arith.constant 6 : i32
    %543 = arith.subi %c6_i32_116, %c3_i32_115 : i32
    %544 = arith.index_cast %543 : i32 to index
    %c0_117 = arith.constant 0 : index
    %545 = vector.load %arg5[%544, %c0_117] : memref<8x128xi32, #tpu.memory_space<vmem>>, vector<1x128xi32>
    %c4_i32_118 = arith.constant 4 : i32
    %546 = vector.broadcast %c4_i32_118 : i32 to vector<1x128xi32>
    %547 = arith.muli %540, %546 : vector<1x128xi32>
    %548 = arith.shrsi %545, %547 : vector<1x128xi32>
    %c15_i32_119 = arith.constant 15 : i32
    %549 = vector.broadcast %c15_i32_119 : i32 to vector<1x128xi32>
    %550 = arith.andi %548, %549 : vector<1x128xi32>
    %551 = vector.broadcast %543 : i32 to vector<1x128xi32>
    %552 = arith.cmpi eq, %551, %3 : vector<1x128xi32>
    %553 = arith.select %552, %502, %550 : vector<1x128xi1>, vector<1x128xi32>
    %554 = arith.index_cast %543 : i32 to index
    %c0_120 = arith.constant 0 : index
    %555 = vector.load %arg4[%554, %c0_120] : memref<8x128xi32, #tpu.memory_space<vmem>>, vector<1x128xi32>
    tpu.vector_store %arg4[%554, %c0_120], %553 {strides = array<i32>} : memref<8x128xi32, #tpu.memory_space<vmem>>, vector<1x128xi32>,
    %c4_i32_121 = arith.constant 4 : i32
    %c6_i32_122 = arith.constant 6 : i32
    %556 = arith.subi %c6_i32_122, %c4_i32_121 : i32
    %557 = arith.index_cast %556 : i32 to index
    %c0_123 = arith.constant 0 : index
    %558 = vector.load %arg5[%557, %c0_123] : memref<8x128xi32, #tpu.memory_space<vmem>>, vector<1x128xi32>
    %c4_i32_124 = arith.constant 4 : i32
    %559 = vector.broadcast %c4_i32_124 : i32 to vector<1x128xi32>
    %560 = arith.muli %553, %559 : vector<1x128xi32>
    %561 = arith.shrsi %558, %560 : vector<1x128xi32>
    %c15_i32_125 = arith.constant 15 : i32
    %562 = vector.broadcast %c15_i32_125 : i32 to vector<1x128xi32>
    %563 = arith.andi %561, %562 : vector<1x128xi32>
    %564 = vector.broadcast %556 : i32 to vector<1x128xi32>
    %565 = arith.cmpi eq, %564, %3 : vector<1x128xi32>
    %566 = arith.select %565, %502, %563 : vector<1x128xi1>, vector<1x128xi32>
    %567 = arith.index_cast %556 : i32 to index
    %c0_126 = arith.constant 0 : index
    %568 = vector.load %arg4[%567, %c0_126] : memref<8x128xi32, #tpu.memory_space<vmem>>, vector<1x128xi32>
    tpu.vector_store %arg4[%567, %c0_126], %566 {strides = array<i32>} : memref<8x128xi32, #tpu.memory_space<vmem>>, vector<1x128xi32>,
    %c5_i32_127 = arith.constant 5 : i32
    %c6_i32_128 = arith.constant 6 : i32
    %569 = arith.subi %c6_i32_128, %c5_i32_127 : i32
    %570 = arith.index_cast %569 : i32 to index
    %c0_129 = arith.constant 0 : index
    %571 = vector.load %arg5[%570, %c0_129] : memref<8x128xi32, #tpu.memory_space<vmem>>, vector<1x128xi32>
    %c4_i32_130 = arith.constant 4 : i32
    %572 = vector.broadcast %c4_i32_130 : i32 to vector<1x128xi32>
    %573 = arith.muli %566, %572 : vector<1x128xi32>
    %574 = arith.shrsi %571, %573 : vector<1x128xi32>
    %c15_i32_131 = arith.constant 15 : i32
    %575 = vector.broadcast %c15_i32_131 : i32 to vector<1x128xi32>
    %576 = arith.andi %574, %575 : vector<1x128xi32>
    %577 = vector.broadcast %569 : i32 to vector<1x128xi32>
    %578 = arith.cmpi eq, %577, %3 : vector<1x128xi32>
    %579 = arith.select %578, %502, %576 : vector<1x128xi1>, vector<1x128xi32>
    %580 = arith.index_cast %569 : i32 to index
    %c0_132 = arith.constant 0 : index
    %581 = vector.load %arg4[%580, %c0_132] : memref<8x128xi32, #tpu.memory_space<vmem>>, vector<1x128xi32>
    tpu.vector_store %arg4[%580, %c0_132], %579 {strides = array<i32>} : memref<8x128xi32, #tpu.memory_space<vmem>>, vector<1x128xi32>,
    %c6_i32_133 = arith.constant 6 : i32
    %c6_i32_134 = arith.constant 6 : i32
    %582 = arith.subi %c6_i32_134, %c6_i32_133 : i32
    %583 = arith.index_cast %582 : i32 to index
    %c0_135 = arith.constant 0 : index
    %584 = vector.load %arg5[%583, %c0_135] : memref<8x128xi32, #tpu.memory_space<vmem>>, vector<1x128xi32>
    %c4_i32_136 = arith.constant 4 : i32
    %585 = vector.broadcast %c4_i32_136 : i32 to vector<1x128xi32>
    %586 = arith.muli %579, %585 : vector<1x128xi32>
    %587 = arith.shrsi %584, %586 : vector<1x128xi32>
    %c15_i32_137 = arith.constant 15 : i32
    %588 = vector.broadcast %c15_i32_137 : i32 to vector<1x128xi32>
    %589 = arith.andi %587, %588 : vector<1x128xi32>
    %590 = vector.broadcast %582 : i32 to vector<1x128xi32>
    %591 = arith.cmpi eq, %590, %3 : vector<1x128xi32>
    %592 = arith.select %591, %502, %589 : vector<1x128xi1>, vector<1x128xi32>
    %593 = arith.index_cast %582 : i32 to index
    %c0_138 = arith.constant 0 : index
    %594 = vector.load %arg4[%593, %c0_138] : memref<8x128xi32, #tpu.memory_space<vmem>>, vector<1x128xi32>
    tpu.vector_store %arg4[%593, %c0_138], %592 {strides = array<i32>} : memref<8x128xi32, #tpu.memory_space<vmem>>, vector<1x128xi32>,
    %c7_i32_139 = arith.constant 7 : i32
    return
  }
  func.func @transform_0(%arg0: i32) -> (i32, i32) {
    %c0_i32 = arith.constant 0 : i32
    %c0_i32_0 = arith.constant 0 : i32
    return %c0_i32, %arg0 : i32, i32
  }
  func.func @transform_1(%arg0: i32) -> (i32, i32, i32) {
    %c0_i32 = arith.constant 0 : i32
    %c0_i32_0 = arith.constant 0 : i32
    %c0_i32_1 = arith.constant 0 : i32
    return %c0_i32, %c0_i32_0, %arg0 : i32, i32, i32
  }
  func.func @transform_2(%arg0: i32) -> (i32, i32) {
    %c0_i32 = arith.constant 0 : i32
    %c0_i32_0 = arith.constant 0 : i32
    %c0_i32_1 = arith.constant 0 : i32
    return %c0_i32, %c0_i32_0 : i32, i32
  }
  func.func @transform_3(%arg0: i32) -> (i32, i32) {
    %c0_i32 = arith.constant 0 : i32
    %c0_i32_0 = arith.constant 0 : i32
    return %c0_i32, %arg0 : i32, i32
  }
}

</mosaic_0001>

<bundles_post_ra>
// kernel: ssvm_forward.1
= control target key start
LH: loop header
LB: loop body
LE: loop exit
PB: predicated region body
PF: predicated region fallthrough
CT: control target
= control target key end

     0   :  { %v646_v0 = vmov 1   ;;  %v647_v1 = vmov 4   ;;  %v648_v3 = vmov 2   ;;  %v649_v4 = vmov 0   ;;  %s1045_s2 = inlined_call_operand.vmem [shape: f32[6,6], index: 2, kind: input, shape index: {}]   ;;  %s1046_s1 = inlined_call_operand.vmem [shape: f32[8,6,128], index: 1, kind: input, shape index: {}]   ;;  %s1047_s0 = inlined_call_operand.vmem [shape: s32[1,128], index: 0, kind: input, shape index: {}]   ;;  %s1048_s3 = inlined_call_operand.vmem [shape: s32[8,128], index: 3, kind: output, shape index: {}]  }
   0x1   :  { %642 = vset.pattern.permute.xlu1 %v646_v0  ;;  %640 = vset.pattern.permute.xlu0 %v647_v1  ;;  %v14_v2 = vld [vmem:[%s1045_s2] sm:$0x3f]  ;;  %v650_v5 = vmov 3   ;;  %v651_v6 = vmov 5   ;;  %v17_v7 = vlaneseq  ;;  %v626_v46 = vld [vmem:[%s1046_s1 + $0x8] sm:$0x3f] }
   0x2   :  { %37 = vperm.xlu1 %642, %v14_v2   ;;  %23 = vperm.xlu0 %640, %v14_v2   ;;  %v20_v9 = vld [vmem:[%s1046_s1] sm:$0x3f]  ;;  %vm97_vm7 = vcmask 1045504  }
   0x3   :  { %v680_v8 = vshrl.u32 %v17_v7, 7  ;;  %v711_v19 = vld [vmem:[%s1047_s0] sm:$0x1] }
   0x4   :  { %vm95_vm0 = vcmp.gt.s32.totalorder %v711_v19, 1 }
   0x5   :  { %v686_v10 = vsub.s32 0, %v680_v8  ;;  %v689_v11 = vsub.s32 1, %v680_v8  ;;  %v699_v15 = vsub.s32 2, %v680_v8  ;;  %v706_v18 = vsub.s32 4, %v680_v8 }
   0x6   :  { %643 = vset.pattern.permute.xlu1 %v648_v3  ;;  %641 = vset.pattern.permute.xlu0 %v649_v4  ;;  %v718_v22 = vsub.s32 3, %v680_v8  ;;  %v721_v23 = vsub.s32 5, %v680_v8  ;;  %v107_v30 = vsel %vm95_vm0, 1, %v649_v4  ;;  %v749_v42 = vmul.u32 4, %v680_v8 }
   0x7   :  { %46 = vperm.xlu1 %643, %v14_v2   ;;  %28 = vperm.xlu0 %641, %v14_v2   ;;  %v111_v37 = vrot.slane %v107_v30, %v686_v10 }
   0x9   :  { %vm755_vm6 = vcmp.eq.s32.totalorder %v111_v37, 1 }
   0xb   :  { %644 = vset.pattern.permute.xlu1 %v650_v5  ;;  %645 = vset.pattern.permute.xlu0 %v651_v6 }
   0xc   :  { %55 = vperm.xlu1 %644, %v14_v2   ;;  %69 = vperm.xlu0 %645, %v14_v2  }
  0x81   :  { %v691_v12 = vpop.permute.xlu1 %37  ;;  %v693_v13 = vpop.permute.xlu0 %23 }
  0x82   :  { %v696_v14 = vadd.f32 %v693_v13, %v20_v9 }
  0x84   :  { %v34_v16 = vrot.slane %v696_v14, %v686_v10  ;;  %v43_v17 = vrot.slane %v696_v14, %v689_v11  ;;  %v52_v24 = vrot.slane %v696_v14, %v699_v15  ;;  %v66_v27 = vrot.slane %v696_v14, %v706_v18 }
  0x85   :  { %v61_v28 = vrot.slane %v696_v14, %v718_v22  ;;  %v75_v29 = vrot.slane %v696_v14, %v721_v23 }
  0x86   :  { %v713_v20 = vpop.permute.xlu1 %46  ;;  %v715_v21 = vpop.permute.xlu0 %28  ;;  %v44_v26 = vadd.f32 %v43_v17, %v691_v12  ;;  %v67_v35 = vadd.f32 %v66_v27, %v693_v13 }
  0x87   :  { %v35_v25 = vadd.f32 %v34_v16, %v715_v21  ;;  %v53_v32 = vadd.f32 %v52_v24, %v713_v20 }
  0x89   :  { %vm77_vm1 = vcmp.ge.f32.partialorder %v35_v25, %v44_v26 }
  0x8a   :  { %v78_v38 = vsel %vm77_vm1, %v35_v25, %v44_v26  ;;  %v79_v41 = vsel %vm77_vm1, 0, %v646_v0 }
  0x8b   :  { %v737_v31 = vpop.permute.xlu1 %55  ;;  %v740_v33 = vpop.permute.xlu0 %69 }
  0x8c   :  { %v62_v34 = vadd.f32 %v61_v28, %v737_v31  ;;  %v76_v36 = vadd.f32 %v75_v29, %v740_v33 }
  0x8e   :  { %vm80_vm2 = vcmp.ge.f32.partialorder %v53_v32, %v62_v34  ;;  %vm83_vm3 = vcmp.ge.f32.partialorder %v67_v35, %v76_v36 }
  0x8f   :  { %v81_v39 = vsel %vm80_vm2, %v53_v32, %v62_v34  ;;  %v82_v40 = vsel %vm80_vm2, 2, %v650_v5  ;;  %v84_v44 = vsel %vm83_vm3, %v67_v35, %v76_v36  ;;  %v85_v47 = vsel %vm83_vm3, 4, %v651_v6  ;;  %v627_v32 = vld [vmem:[%s1046_s1 + $0x10] sm:$0x3f] }
  0x90   :  { %vm86_vm4 = vcmp.ge.f32.partialorder %v78_v38, %v81_v39  ;;  %vm162_vm2 = vcmp.gt.s32.totalorder %v711_v19, 2 }
  0x91   :  { %v88_v43 = vsel %vm86_vm4, %v79_v41, %v82_v40  ;;  %v87_v45 = vsel %vm86_vm4, %v78_v38, %v81_v39 }
  0x92   :  { %vm89_vm5 = vcmp.ge.f32.partialorder %v87_v45, %v84_v44 }
  0x93   :  { %v90_v49 = vsel %vm89_vm5, %v87_v45, %v84_v44  ;;  %v91_v50 = vsel %vm89_vm5, %v88_v43, %v85_v47 }
  0x94   :  { %v759_v51 = vadd.f32 %v626_v46, %v90_v49  ;;  %v96_v52 = vshll.u32 %v91_v50, %v749_v42 }
  0x96   :  { %v98_v53 = vsel %vm97_vm7, %v96_v52, 0  ;;  %v113_v54 = vsel %vm755_vm6, %v759_v51, %v696_v14  ;;  %v117_v55 = vrot.slane %v759_v51, %v686_v10  ;;  %v122_v56 = vrot.slane %v759_v51, %v689_v11 }
  0x97   :  { %v99_v57 = vrot.slane %v98_v53, 4  ;;  %v127_v58 = vrot.slane %v759_v51, %v699_v15  ;;  %v132_v59 = vrot.slane %v759_v51, %v718_v22  ;;  %v137_v60 = vrot.slane %v759_v51, %v706_v18 }
  0x98   :  { %v118_v61 = vadd.f32 %v117_v55, %v715_v21  ;;  %v123_v62 = vadd.f32 %v122_v56, %v691_v12  ;;  %v142_v63 = vrot.slane %v759_v51, %v721_v23 }
  0x99   :  { %v100_v1 = vadd.s32 %v99_v57, %v98_v53  ;;  %v128_v2 = vadd.f32 %v127_v58, %v713_v20  ;;  %v133_v3 = vadd.f32 %v132_v59, %v737_v31  ;;  %v138_v7 = vadd.f32 %v137_v60, %v693_v13 }
  0x9a   :  { %v143_v9 = vadd.f32 %v142_v63, %v740_v33  ;;  %vm144_vm8 = vcmp.ge.f32.partialorder %v118_v61, %v123_v62 }
  0x9b   :  { %v101_v16 = vrot.slane %v100_v1, 2  ;;  %v145_v17 = vsel %vm144_vm8, %v118_v61, %v123_v62  ;;  %v146_v24 = vsel %vm144_vm8, 0, %v646_v0  ;;  %vm147_vm9 = vcmp.ge.f32.partialorder %v128_v2, %v133_v3 }
  0x9c   :  { %v148_v25 = vsel %vm147_vm9, %v128_v2, %v133_v3  ;;  %v149_v26 = vsel %vm147_vm9, 2, %v650_v5  ;;  %vm150_vm10 = vcmp.ge.f32.partialorder %v138_v7, %v143_v9 }
  0x9d   :  { %v102_v27 = vadd.s32 %v101_v16, %v100_v1  ;;  %vm153_vm11 = vcmp.ge.f32.partialorder %v145_v17, %v148_v25  ;;  %v151_v28 = vsel %vm150_vm10, %v138_v7, %v143_v9  ;;  %v152_v35 = vsel %vm150_vm10, 4, %v651_v6 }
  0x9e   :  { %v154_v29 = vsel %vm153_vm11, %v145_v17, %v148_v25  ;;  %v155_v30 = vsel %vm153_vm11, %v146_v24, %v149_v26  ;;  %v628_v17 = vld [vmem:[%s1046_s1 + $0x18] sm:$0x3f]  ;;  %vm228_vm10 = vcmp.gt.s32.totalorder %v711_v19, 3 }
  0x9f   :  { %v103_v34 = vrot.slane %v102_v27, 1  ;;  %vm156_vm12 = vcmp.ge.f32.partialorder %v154_v29, %v151_v28 }
  0xa0   :  { %v157_v36 = vsel %vm156_vm12, %v154_v29, %v151_v28  ;;  %v158_v37 = vsel %vm156_vm12, %v155_v30, %v152_v35 }
  0xa1   :  { %v104_v38 = vadd.s32 %v103_v34, %v102_v27  ;;  %v791_v39 = vadd.f32 %v627_v32, %v157_v36  ;;  %v163_v40 = vshll.u32 %v158_v37, %v749_v42 }
  0xa3   :  { %v105_v41 = vsel %vm95_vm0, %v104_v38, 0  ;;  %v164_v43 = vsel %vm97_vm7, %v163_v40, 0  ;;  %v183_v44 = vrot.slane %v791_v39, %v686_v10  ;;  %v188_v46 = vrot.slane %v791_v39, %v689_v11 }
  0xa4   :  { %106 = vst [vmem:[#allocation2] sm:$0x1] %v105_v41  ;;  %v165_v45 = vrot.slane %v164_v43, 4  ;;  %v193_v47 = vrot.slane %v791_v39, %v699_v15  ;;  %v198_v49 = vrot.slane %v791_v39, %v718_v22  ;;  %v203_v52 = vrot.slane %v791_v39, %v706_v18 }
  0xa5   :  { %v184_v50 = vadd.f32 %v183_v44, %v715_v21  ;;  %v208_v53 = vrot.slane %v791_v39, %v721_v23  ;;  %v189_v56 = vadd.f32 %v188_v46, %v691_v12 }
  0xa6   :  { %v166_v55 = vadd.s32 %v165_v45, %v164_v43  ;;  %v194_v57 = vadd.f32 %v193_v47, %v713_v20  ;;  %v199_v58 = vadd.f32 %v198_v49, %v737_v31  ;;  %v204_v59 = vadd.f32 %v203_v52, %v693_v13 }
  0xa7   :  { %v209_v60 = vadd.f32 %v208_v53, %v740_v33  ;;  %vm210_vm13 = vcmp.ge.f32.partialorder %v184_v50, %v189_v56 }
  0xa8   :  { %v167_v61 = vrot.slane %v166_v55, 2  ;;  %vm213_vm14 = vcmp.ge.f32.partialorder %v194_v57, %v199_v58  ;;  %v211_v62 = vsel %vm210_vm13, %v184_v50, %v189_v56  ;;  %v212_v63 = vsel %vm210_vm13, 0, %v646_v0 }
  0xa9   :  { %v214_v1 = vsel %vm213_vm14, %v194_v57, %v199_v58  ;;  %v215_v2 = vsel %vm213_vm14, 2, %v650_v5  ;;  %vm216_vm15 = vcmp.ge.f32.partialorder %v204_v59, %v209_v60 }
  0xaa   :  { %v168_v3 = vadd.s32 %v167_v61, %v166_v55  ;;  %vm219_vm0 = vcmp.ge.f32.partialorder %v211_v62, %v214_v1  ;;  %v217_v7 = vsel %vm216_vm15, %v204_v59, %v209_v60  ;;  %v218_v25 = vsel %vm216_vm15, 4, %v651_v6 }
  0xab   :  { %v220_v9 = vsel %vm219_vm0, %v211_v62, %v214_v1  ;;  %v221_v16 = vsel %vm219_vm0, %v212_v63, %v215_v2  ;;  %v629_v63 = vld [vmem:[%s1046_s1 + $0x20] sm:$0x3f]  ;;  %vm294_vm0 = vcmp.gt.s32.totalorder %v711_v19, 4 }
  0xac   :  { %v169_v24 = vrot.slane %v168_v3, 1  ;;  %vm222_vm1 = vcmp.ge.f32.partialorder %v220_v9, %v217_v7 }
  0xad   :  { %v223_v26 = vsel %vm222_vm1, %v220_v9, %v217_v7  ;;  %v224_v27 = vsel %vm222_vm1, %v221_v16, %v218_v25  ;;  %vm360_vm1 = vcmp.gt.s32.totalorder %v711_v19, 5 }
  0xae   :  { %v170_v28 = vadd.s32 %v169_v24, %v168_v3  ;;  %v821_v29 = vadd.f32 %v628_v17, %v223_v26  ;;  %v229_v30 = vshll.u32 %v224_v27, %v749_v42 }
  0xb0   :  { %v171_v32 = vsel %vm162_vm2, %v170_v28, 0  ;;  %v230_v34 = vsel %vm97_vm7, %v229_v30, 0  ;;  %v249_v35 = vrot.slane %v821_v29, %v686_v10  ;;  %v254_v37 = vrot.slane %v821_v29, %v689_v11 }
  0xb1   :  { %172 = vst [vmem:[#allocation2 + $0x1] sm:$0x1] %v171_v32  ;;  %v231_v36 = vrot.slane %v230_v34, 4  ;;  %v259_v38 = vrot.slane %v821_v29, %v699_v15  ;;  %v264_v40 = vrot.slane %v821_v29, %v718_v22  ;;  %v269_v43 = vrot.slane %v821_v29, %v706_v18 }
  0xb2   :  { %v250_v41 = vadd.f32 %v249_v35, %v715_v21  ;;  %v274_v44 = vrot.slane %v821_v29, %v721_v23  ;;  %v255_v46 = vadd.f32 %v254_v37, %v691_v12 }
  0xb3   :  { %v232_v45 = vadd.s32 %v231_v36, %v230_v34  ;;  %v260_v47 = vadd.f32 %v259_v38, %v713_v20  ;;  %v265_v49 = vadd.f32 %v264_v40, %v737_v31  ;;  %v270_v50 = vadd.f32 %v269_v43, %v693_v13 }
  0xb4   :  { %v275_v52 = vadd.f32 %v274_v44, %v740_v33  ;;  %vm276_vm3 = vcmp.ge.f32.partialorder %v250_v41, %v255_v46 }
  0xb5   :  { %v233_v53 = vrot.slane %v232_v45, 2  ;;  %vm279_vm4 = vcmp.ge.f32.partialorder %v260_v47, %v265_v49  ;;  %v277_v55 = vsel %vm276_vm3, %v250_v41, %v255_v46  ;;  %v278_v56 = vsel %vm276_vm3, 0, %v646_v0 }
  0xb6   :  { %v280_v57 = vsel %vm279_vm4, %v260_v47, %v265_v49  ;;  %v281_v58 = vsel %vm279_vm4, 2, %v650_v5  ;;  %vm282_vm5 = vcmp.ge.f32.partialorder %v270_v50, %v275_v52 }
  0xb7   :  { %v234_v59 = vadd.s32 %v233_v53, %v232_v45  ;;  %vm285_vm8 = vcmp.ge.f32.partialorder %v277_v55, %v280_v57  ;;  %v283_v60 = vsel %vm282_vm5, %v270_v50, %v275_v52  ;;  %v284_v2 = vsel %vm282_vm5, 4, %v651_v6 }
  0xb8   :  { %v286_v61 = vsel %vm285_vm8, %v277_v55, %v280_v57  ;;  %v287_v62 = vsel %vm285_vm8, %v278_v56, %v281_v58  ;;  %v630_v57 = vld [vmem:[%s1046_s1 + $0x28] sm:$0x3f] }
  0xb9   :  { %v235_v1 = vrot.slane %v234_v59, 1  ;;  %vm288_vm9 = vcmp.ge.f32.partialorder %v286_v61, %v283_v60 }
  0xba   :  { %v289_v3 = vsel %vm288_vm9, %v286_v61, %v283_v60  ;;  %v290_v7 = vsel %vm288_vm9, %v287_v62, %v284_v2  ;;  %v173_v2 = vsel %vm162_vm2, 1, %v649_v4  ;;  %vm426_vm2 = vcmp.gt.s32.totalorder %v711_v19, 6 }
  0xbb   :  { %v236_v9 = vadd.s32 %v235_v1, %v234_v59  ;;  %v852_v16 = vadd.f32 %v629_v63, %v289_v3  ;;  %v295_v17 = vshll.u32 %v290_v7, %v749_v42  ;;  %v239_v3 = vsel %vm228_vm10, 1, %v649_v4 }
  0xbd   :  { %v237_v24 = vsel %vm228_vm10, %v236_v9, 0  ;;  %v296_v25 = vsel %vm97_vm7, %v295_v17, 0  ;;  %v315_v26 = vrot.slane %v852_v16, %v686_v10  ;;  %v320_v28 = vrot.slane %v852_v16, %v689_v11 }
  0xbe   :  { %238 = vst [vmem:[#allocation2 + $0x2] sm:$0x1] %v237_v24  ;;  %v297_v27 = vrot.slane %v296_v25, 4  ;;  %v325_v30 = vrot.slane %v852_v16, %v699_v15  ;;  %v330_v32 = vrot.slane %v852_v16, %v718_v22  ;;  %v335_v35 = vrot.slane %v852_v16, %v706_v18 }
  0xbf   :  { %v316_v34 = vadd.f32 %v315_v26, %v715_v21  ;;  %v340_v36 = vrot.slane %v852_v16, %v721_v23  ;;  %v321_v38 = vadd.f32 %v320_v28, %v691_v12  ;;  %v305_v28 = vsel %vm294_vm0, 1, %v649_v4 }
  0xc0   :  { %v298_v37 = vadd.s32 %v297_v27, %v296_v25  ;;  %v326_v40 = vadd.f32 %v325_v30, %v713_v20  ;;  %v331_v41 = vadd.f32 %v330_v32, %v737_v31  ;;  %v336_v43 = vadd.f32 %v335_v35, %v693_v13 }
  0xc1   :  { %v341_v44 = vadd.f32 %v340_v36, %v740_v33  ;;  %vm342_vm11 = vcmp.ge.f32.partialorder %v316_v34, %v321_v38 }
  0xc2   :  { %v299_v45 = vrot.slane %v298_v37, 2  ;;  %vm345_vm12 = vcmp.ge.f32.partialorder %v326_v40, %v331_v41  ;;  %v343_v46 = vsel %vm342_vm11, %v316_v34, %v321_v38  ;;  %v344_v47 = vsel %vm342_vm11, 0, %v646_v0 }
  0xc3   :  { %v346_v49 = vsel %vm345_vm12, %v326_v40, %v331_v41  ;;  %v347_v50 = vsel %vm345_vm12, 2, %v650_v5  ;;  %vm348_vm13 = vcmp.ge.f32.partialorder %v336_v43, %v341_v44  ;;  %v371_v40 = vsel %vm360_vm1, 1, %v649_v4 }
  0xc4   :  { %v300_v52 = vadd.s32 %v299_v45, %v298_v37  ;;  %vm351_vm14 = vcmp.ge.f32.partialorder %v343_v46, %v346_v49  ;;  %v349_v53 = vsel %vm348_vm13, %v336_v43, %v341_v44  ;;  %v350_v59 = vsel %vm348_vm13, 4, %v651_v6 }
  0xc5   :  { %v352_v55 = vsel %vm351_vm14, %v343_v46, %v346_v49  ;;  %v353_v56 = vsel %vm351_vm14, %v344_v47, %v347_v50  ;;  %v177_v44 = vrot.slane %v173_v2, %v686_v10  ;;  %vm492_vm13 = vcmp.gt.s32.totalorder %v711_v19, 7 }
  0xc6   :  { %v301_v58 = vrot.slane %v300_v52, 1  ;;  %vm354_vm15 = vcmp.ge.f32.partialorder %v352_v55, %v349_v53 }
  0xc7   :  { %v355_v60 = vsel %vm354_vm15, %v352_v55, %v349_v53  ;;  %v356_v61 = vsel %vm354_vm15, %v353_v56, %v350_v59  ;;  %v309_v55 = vrot.slane %v305_v28, %v686_v10  ;;  %v631_v59 = vld [vmem:[%s1046_s1 + $0x30] sm:$0x3f]  ;;  %vm932_vm10 = vcmp.eq.s32.totalorder %v177_v44, 1 }
  0xc8   :  { %v302_v62 = vadd.s32 %v301_v58, %v300_v52  ;;  %v883_v63 = vadd.f32 %v630_v57, %v355_v60  ;;  %v361_v1 = vshll.u32 %v356_v61, %v749_v42  ;;  %v243_v52 = vrot.slane %v239_v3, %v686_v10 }
  0xc9   :  { %v375_v3 = vrot.slane %v371_v40, %v686_v10  ;;  %vm940_vm12 = vcmp.eq.s32.totalorder %v309_v55, 1 }
  0xca   :  { %v303_v7 = vsel %vm294_vm0, %v302_v62, 0  ;;  %v362_v9 = vsel %vm97_vm7, %v361_v1, 0  ;;  %v381_v17 = vrot.slane %v883_v63, %v686_v10  ;;  %v386_v25 = vrot.slane %v883_v63, %v689_v11 }
  0xcb   :  { %304 = vst [vmem:[#allocation2 + $0x3] sm:$0x1] %v303_v7  ;;  %v363_v24 = vrot.slane %v362_v9, 4  ;;  %v391_v26 = vrot.slane %v883_v63, %v699_v15  ;;  %v396_v27 = vrot.slane %v883_v63, %v718_v22  ;;  %v401_v32 = vrot.slane %v883_v63, %v706_v18 }
  0xcc   :  { %v382_v30 = vadd.f32 %v381_v17, %v715_v21  ;;  %v406_v34 = vrot.slane %v883_v63, %v721_v23  ;;  %v387_v36 = vadd.f32 %v386_v25, %v691_v12  ;;  %v437_v62 = vsel %vm426_vm2, 1, %v649_v4 }
  0xcd   :  { %v364_v35 = vadd.s32 %v363_v24, %v362_v9  ;;  %v392_v37 = vadd.f32 %v391_v26, %v713_v20  ;;  %v397_v38 = vadd.f32 %v396_v27, %v737_v31  ;;  %v402_v41 = vadd.f32 %v401_v32, %v693_v13 }
  0xce   :  { %v407_v43 = vadd.f32 %v406_v34, %v740_v33  ;;  %vm408_vm3 = vcmp.ge.f32.partialorder %v382_v30, %v387_v36  ;;  %vm936_vm11 = vcmp.eq.s32.totalorder %v243_v52, 1  ;;  %vm962_vm14 = vcmp.eq.s32.totalorder %v375_v3, 1  ;;  %v632_v3 = vld [vmem:[%s1046_s1 + $0x38] sm:$0x3f] }
  0xcf   :  { %v365_v45 = vrot.slane %v364_v35, 2  ;;  %vm411_vm4 = vcmp.ge.f32.partialorder %v392_v37, %v397_v38  ;;  %v409_v46 = vsel %vm408_vm3, %v382_v30, %v387_v36  ;;  %v410_v47 = vsel %vm408_vm3, 0, %v646_v0 }
  0xd0   :  { %v412_v49 = vsel %vm411_vm4, %v392_v37, %v397_v38  ;;  %v413_v50 = vsel %vm411_vm4, 2, %v650_v5  ;;  %vm414_vm5 = vcmp.ge.f32.partialorder %v402_v41, %v407_v43  ;;  %v441_v30 = vrot.slane %v437_v62, %v686_v10 }
  0xd1   :  { %v366_v53 = vadd.s32 %v365_v45, %v364_v35  ;;  %vm417_vm8 = vcmp.ge.f32.partialorder %v409_v46, %v412_v49  ;;  %v415_v56 = vsel %vm414_vm5, %v402_v41, %v407_v43  ;;  %v416_v61 = vsel %vm414_vm5, 4, %v651_v6 }
  0xd2   :  { %v418_v57 = vsel %vm417_vm8, %v409_v46, %v412_v49  ;;  %v419_v58 = vsel %vm417_vm8, %v410_v47, %v413_v50  ;;  %v503_v43 = vsel %vm492_vm13, 1, %v649_v4 }
  0xd3   :  { %v367_v60 = vrot.slane %v366_v53, 1  ;;  %vm420_vm9 = vcmp.ge.f32.partialorder %v418_v57, %v415_v56  ;;  %v507_v4 = vrot.slane %v503_v43, %v686_v10 }
  0xd4   :  { %v421_v1 = vsel %vm420_vm9, %v418_v57, %v415_v56  ;;  %v422_v2 = vsel %vm420_vm9, %v419_v58, %v416_v61  ;;  %v179_v61 = vsel %vm932_vm10, %v791_v39, %v113_v54 }
  0xd5   :  { %v368_v7 = vadd.s32 %v367_v60, %v366_v53  ;;  %v425_v9 = vadd.f32 %v631_v59, %v421_v1  ;;  %v427_v17 = vshll.u32 %v422_v2, %v749_v42  ;;  %vm508_vm6 = vcmp.eq.s32.totalorder %v507_v4, 1 }
  0xd7   :  { %v369_v27 = vsel %vm360_vm1, %v368_v7, 0  ;;  %v428_v28 = vsel %vm97_vm7, %v427_v17, 0  ;;  %v447_v32 = vrot.slane %v425_v9, %v686_v10  ;;  %v452_v35 = vrot.slane %v425_v9, %v689_v11 }
  0xd8   :  { %370 = vst [vmem:[#allocation2 + $0x4] sm:$0x1] %v369_v27  ;;  %v429_v34 = vrot.slane %v428_v28, 4  ;;  %v457_v36 = vrot.slane %v425_v9, %v699_v15  ;;  %v462_v37 = vrot.slane %v425_v9, %v718_v22  ;;  %v467_v40 = vrot.slane %v425_v9, %v706_v18 }
  0xd9   :  { %v448_v38 = vadd.f32 %v447_v32, %v715_v21  ;;  %v472_v41 = vrot.slane %v425_v9, %v721_v23  ;;  %v453_v45 = vadd.f32 %v452_v35, %v691_v12  ;;  %vm971_vm1 = vcmp.eq.s32.totalorder %v441_v30, 1 }
  0xda   :  { %v430_v44 = vadd.s32 %v429_v34, %v428_v28  ;;  %v458_v46 = vadd.f32 %v457_v36, %v713_v20  ;;  %v463_v47 = vadd.f32 %v462_v37, %v737_v31  ;;  %v468_v50 = vadd.f32 %v467_v40, %v693_v13 }
  0xdb   :  { %v473_v52 = vadd.f32 %v472_v41, %v740_v33  ;;  %vm474_vm15 = vcmp.ge.f32.partialorder %v448_v38, %v453_v45  ;;  %v245_v7 = vsel %vm936_vm11, %v821_v29, %v179_v61  ;;  %v652_v28 = vmov 1966171168  }
  0xdc   :  { %v431_v53 = vrot.slane %v430_v44, 2  ;;  %vm477_vm0 = vcmp.ge.f32.partialorder %v458_v46, %v463_v47  ;;  %v475_v55 = vsel %vm474_vm15, %v448_v38, %v453_v45  ;;  %v476_v56 = vsel %vm474_vm15, 0, %v646_v0 }
  0xdd   :  { %v478_v57 = vsel %vm477_vm0, %v458_v46, %v463_v47  ;;  %v479_v58 = vsel %vm477_vm0, 2, %v650_v5  ;;  %vm480_vm3 = vcmp.ge.f32.partialorder %v468_v50, %v473_v52  ;;  %v311_v14 = vsel %vm940_vm12, %v852_v16, %v245_v7 }
  0xde   :  { %v432_v59 = vadd.s32 %v431_v53, %v430_v44  ;;  %vm483_vm4 = vcmp.ge.f32.partialorder %v475_v55, %v478_v57  ;;  %v481_v62 = vsel %vm480_vm3, %v468_v50, %v473_v52  ;;  %v482_v48 = vsel %vm480_vm3, 4, %v651_v6 }
  0xdf   :  { %v484_v1 = vsel %vm483_vm4, %v475_v55, %v478_v57  ;;  %v485_v2 = vsel %vm483_vm4, %v476_v56, %v479_v58  ;;  %v377_v39 = vsel %vm962_vm14, %v883_v63, %v311_v14  ;;  %v563_v30 = vunpack.c.l.s4 %v652_v28 }
  0xe0   :  { %v433_v17 = vrot.slane %v432_v59, 1  ;;  %vm486_vm5 = vcmp.ge.f32.partialorder %v484_v1, %v481_v62  ;;  %v443_v29 = vsel %vm971_vm1, %v425_v9, %v377_v39 }
  0xe1   :  { %v487_v51 = vsel %vm486_vm5, %v484_v1, %v481_v62  ;;  %v488_v54 = vsel %vm486_vm5, %v485_v2, %v482_v48 }
  0xe2   :  { %v434_v24 = vadd.s32 %v433_v17, %v432_v59  ;;  %v491_v27 = vadd.f32 %v632_v3, %v487_v51  ;;  %v493_v25 = vshll.u32 %v488_v54, %v749_v42  ;;  %v586_v3 = vld [vmem:[#allocation2 + $0x4] sm:$0x1]  ;;  %v593_v51 = vld [vmem:[#allocation2 + $0x3] sm:$0x1] }
  0xe4   :  { %v435_v26 = vsel %vm426_vm2, %v434_v24, 0  ;;  %v494_v16 = vsel %vm97_vm7, %v493_v25, 0  ;;  %v509_v32 = vsel %vm508_vm6, %v491_v27, %v443_v29  ;;  %v600_v25 = vld [vmem:[#allocation2 + $0x2] sm:$0x1] }
  0xe5   :  { %436 = vst [vmem:[#allocation2 + $0x5] sm:$0x1] %v435_v26  ;;  %v495_v34 = vrot.slane %v494_v16, 4  ;;  %v513_v35 = vrot.slane %v509_v32, %v686_v10  ;;  %v518_v63 = vrot.slane %v509_v32, %v689_v11  ;;  %v523_v36 = vrot.slane %v509_v32, %v699_v15 }
  0xe6   :  { %v528_v42 = vrot.slane %v509_v32, %v718_v22  ;;  %v533_v9 = vrot.slane %v509_v32, %v706_v18  ;;  %v538_v37 = vrot.slane %v509_v32, %v721_v23  ;;  %v564_v15 = vunpack.c.0.s8 %v563_v30 }
  0xe7   :  { %v496_v38 = vadd.s32 %v495_v34, %v494_v16  ;;  %v514_v40 = vadd.f32 %v513_v35, %v715_v21  ;;  %v519_v41 = vadd.f32 %v518_v63, %v691_v12  ;;  %v524_v43 = vadd.f32 %v523_v36, %v713_v20  ;;  %v607_v16 = vld [vmem:[#allocation2 + $0x1] sm:$0x1]  ;;  %v614_v36 = vld [vmem:[#allocation2] sm:$0x1] }
  0xe8   :  { %v529_v44 = vadd.f32 %v528_v42, %v737_v31  ;;  %v534_v10 = vadd.f32 %v533_v9, %v693_v13  ;;  %v539_v11 = vadd.f32 %v538_v37, %v740_v33  ;;  %v567_v13 = vsub.s32 %v564_v15, %v680_v8 }
  0xe9   :  { %v497_v45 = vrot.slane %v496_v38, 2  ;;  %vm540_vm7 = vcmp.ge.f32.partialorder %v514_v40, %v519_v41  ;;  %v625_v8 = vadd.s32 4294967295, %v711_v19 }
  0xea   :  { %v541_v22 = vsel %vm540_vm7, %v514_v40, %v519_v41  ;;  %v542_v18 = vsel %vm540_vm7, 0, %v646_v0  ;;  %vm543_vm2 = vcmp.ge.f32.partialorder %v524_v43, %v529_v44  ;;  %vm546_vm8 = vcmp.ge.f32.partialorder %v534_v10, %v539_v11 }
  0xeb   :  { %v498_v23 = vadd.s32 %v497_v45, %v496_v38  ;;  %v544_v21 = vsel %vm543_vm2, %v524_v43, %v529_v44  ;;  %v545_v12 = vsel %vm543_vm2, 2, %v650_v5  ;;  %v547_v46 = vsel %vm546_vm8, %v534_v10, %v539_v11 }
  0xec   :  { %vm549_vm9 = vcmp.ge.f32.partialorder %v541_v22, %v544_v21  ;;  %v548_v33 = vsel %vm546_vm8, 4, %v651_v6  ;;  %vm560_vm11 = vcmp.eq.s32.totalorder %v625_v8, 6  ;;  %v579_v61 = vld [vmem:[#allocation2 + $0x5] sm:$0x1]  ;;  %vm583_vm12 = vcmp.eq.s32.totalorder %v625_v8, 5 }
  0xed   :  { %v499_v20 = vrot.slane %v498_v23, 1  ;;  %v550_v31 = vsel %vm549_vm9, %v541_v22, %v544_v21  ;;  %v551_v47 = vsel %vm549_vm9, %v542_v18, %v545_v12  ;;  %vm597_vm14 = vcmp.eq.s32.totalorder %v625_v8, 3 }
  0xee   :  { %vm552_vm10 = vcmp.ge.f32.partialorder %v550_v31, %v547_v46  ;;  %vm604_vm15 = vcmp.eq.s32.totalorder %v625_v8, 2  ;;  %vm611_vm0 = vcmp.eq.s32.totalorder %v625_v8, 1  ;;  %vm618_vm1 = vcmp.eq.s32.totalorder %v625_v8, 0 }
  0xef   :  { %v500_v49 = vadd.s32 %v499_v20, %v498_v23  ;;  %v553_v50 = vsel %vm552_vm10, %v551_v47, %v548_v33 }
  0xf0   :  { %554 = vst [vmem:[%s1048_s3 + $0x2] sm:$0x20] %v553_v50  ;;  %v561_v0 = vcombine.high %v553_v50, %v553_v50  ;;  %v556_v53 = vmul.u32 4, %v553_v50 }
  0xf1   :  { %v501_v5 = vsel %vm492_vm13, %v500_v49, 0  ;;  %vm590_vm13 = vcmp.eq.s32.totalorder %v625_v8, 4 }
  0xf2   :  { %502 = vst [vmem:[#allocation2 + $0x6] sm:$0x1] %v501_v5  ;;  %v568_v52 = vrot.slane %v561_v0, %v567_v13  ;;  %v557_v56 = vrot.slane %v556_v53, 5 }
  0xf4   :  { %v569_v4 = vcombine.high %v568_v52, %v568_v52 }
  0xf6   :  { %v576_v55 = vrot.slane %v569_v4, %v567_v13 }
  0xf9   :  { %v555_v6 = vld [vmem:[#allocation2 + $0x6] sm:$0x1] }
  0xfa   :  { %v558_v57 = vshra.s32 %v555_v6, %v557_v56 }
  0xfc   :  { %v559_v58 = vand.u32 15, %v558_v57 }
  0xfe   :  { %v577_v59 = vsel %vm560_vm11, %v576_v55, %v559_v58 }
  0xff   :  { %578 = vst [vmem:[%s1048_s3 + $0x6] sm:$0x1] %v577_v59  ;;  %v580_v60 = vmul.u32 4, %v577_v59 }
 0x101   :  { %v581_v62 = vshra.s32 %v579_v61, %v580_v60 }
 0x103   :  { %v582_v1 = vand.u32 15, %v581_v62 }
 0x105   :  { %v584_v2 = vsel %vm583_vm12, %v576_v55, %v582_v1 }
 0x106   :  { %585 = vst [vmem:[%s1048_s3 + $0x5] sm:$0x1] %v584_v2  ;;  %v587_v19 = vmul.u32 4, %v584_v2 }
 0x108   :  { %v588_v7 = vshra.s32 %v586_v3, %v587_v19 }
 0x10a   :  { %v589_v17 = vand.u32 15, %v588_v7 }
 0x10c   :  { %v591_v48 = vsel %vm590_vm13, %v576_v55, %v589_v17 }
 0x10d   :  { %592 = vst [vmem:[%s1048_s3 + $0x4] sm:$0x1] %v591_v48  ;;  %v594_v14 = vmul.u32 4, %v591_v48 }
 0x10f   :  { %v595_v54 = vshra.s32 %v593_v51, %v594_v14 }
 0x111   :  { %v596_v39 = vand.u32 15, %v595_v54 }
 0x113   :  { %v598_v24 = vsel %vm597_vm14, %v576_v55, %v596_v39 }
 0x114   :  { %599 = vst [vmem:[%s1048_s3 + $0x3] sm:$0x1] %v598_v24  ;;  %v601_v27 = vmul.u32 4, %v598_v24 }
 0x116   :  { %v602_v29 = vshra.s32 %v600_v25, %v601_v27 }
 0x118   :  { %v603_v28 = vand.u32 15, %v602_v29 }
 0x11a   :  { %v605_v30 = vsel %vm604_vm15, %v576_v55, %v603_v28 }
 0x11b   :  { %606 = vst [vmem:[%s1048_s3 + $0x2] sm:$0x1] %v605_v30  ;;  %v608_v26 = vmul.u32 4, %v605_v30 }
 0x11d   :  { %v609_v32 = vshra.s32 %v607_v16, %v608_v26 }
 0x11f   :  { %v610_v34 = vand.u32 15, %v609_v32 }
 0x121   :  { %v612_v35 = vsel %vm611_vm0, %v576_v55, %v610_v34 }
 0x122   :  { %613 = vst [vmem:[%s1048_s3 + $0x1] sm:$0x1] %v612_v35  ;;  %v615_v63 = vmul.u32 4, %v612_v35 }
 0x124   :  { %v616_v42 = vshra.s32 %v614_v36, %v615_v63 }
 0x126   :  { %v617_v9 = vand.u32 15, %v616_v42 }
 0x128   :  { %v619_v37 = vsel %vm618_vm1, %v576_v55, %v617_v9 }
 0x129   :  { %620 = vst [vmem:[%s1048_s3] sm:$0x1] %v619_v37 }

</bundles_post_ra>
